<compile_context>
chip_gen: v5e
topology: v5e:2x2
jax: 0.10.0
libtpu: 0.0.40
codegen_flags: <defaults>
</compile_context>

<pallas_src>
import math

import jax
import jax.numpy as jnp
from jax.experimental import pallas as pl
from jax.experimental.pallas import tpu as pltpu

INPUT_SIZE = 1
HIDDEN_SIZES = [128, 128, 128, 128]
OUTPUT_SIZE = 256
N_LIN = len(HIDDEN_SIZES) + 1  # 4 hidden layers + output layer = 5 Linear's

_INV_SQRT2 = 1.0 / math.sqrt(2.0)
_VMEM_LIMIT_MLP = 32 * 1024 * 1024      # MLP kernels use only a few MiB
_VMEM_LIMIT_MATMUL = 48 * 1024 * 1024   # <= 64 MiB physical VMEM on v7x

_SIZES = [INPUT_SIZE] + HIDDEN_SIZES + [OUTPUT_SIZE]
_PARAM_ELEMS = sum(a * b + b for a, b in zip(_SIZES[:-1], _SIZES[1:]))
_MLP_FLOPS_PER_ROW = 2 * sum(a * b for a, b in zip(_SIZES[:-1], _SIZES[1:]))
_GELU_PER_ROW = sum(HIDDEN_SIZES)  # one erf per hidden activation


def _round_up(a, b):
    return -(-a // b) * b


def _gelu_exact(x):
    # PyTorch nn.GELU() default: 0.5 * x * (1 + erf(x / sqrt(2)))
    return 0.5 * x * (1.0 + jax.lax.erf(x * _INV_SQRT2))


def _mlp_from_refs(x, w_refs, b_refs):
    """MLP over a (rows, 1) tile; weights read at point of use."""
    # First layer has in_features == 1 -> broadcast multiply, not a K=1 matmul.
    h = _gelu_exact(x * w_refs[0][...] + b_refs[0][...])
    for wr, br in zip(w_refs[1:-1], b_refs[1:-1]):
        h = _gelu_exact(
            jnp.dot(h, wr[...], preferred_element_type=jnp.float32) + br[...]
        )
    return (
        jnp.dot(h, w_refs[-1][...], preferred_element_type=jnp.float32)
        + b_refs[-1][...]
    )


# ---------------------------------------------------------------------------
# Kernels
# ---------------------------------------------------------------------------
def _mlp_kernel(v_ref, *refs):
    """refs = (w0..w4, b0..b4, out_ref).  out = MLP(v_tile) -> (rows, 256)."""
    out_ref = refs[-1]
    w_refs = refs[0:N_LIN]
    b_refs = refs[N_LIN:2 * N_LIN]
    out_ref[...] = _mlp_from_refs(v_ref[...], w_refs, b_refs)


def _mlp_t_kernel(v_ref, *refs):
    """Same as _mlp_kernel but writes the tile transposed: (256, rows).

    The transpose runs on the XLU slot (idle while the MXU/VPU do the MLP),
    so the wrapper never needs a standalone HBM-round-trip transpose.
    """
    out_ref = refs[-1]
    w_refs = refs[0:N_LIN]
    b_refs = refs[N_LIN:2 * N_LIN]
    out_ref[...] = _mlp_from_refs(v_ref[...], w_refs, b_refs).T


def _matmul_kernel(f1_ref, f2t_ref, u_ref):
    """Pure (tm, 256) @ (256, tn) tile matmul; RHS already in (K, N) layout."""
    u_ref[...] = jnp.dot(f1_ref[...], f2t_ref[...],
                         preferred_element_type=jnp.float32)


# ---------------------------------------------------------------------------
# Tiling helpers
# ---------------------------------------------------------------------------
def _replicated_spec(shape):
    return pl.BlockSpec(shape, lambda *idx, _z=(0,) * len(shape): _z)


def _pick_matmul_tile(n, max_tile, align):
    """Tile <= max_tile (multiple of `align`) minimizing padding waste."""
    n_aligned = _round_up(n, align)
    if n_aligned <= max_tile:
        return n_aligned                      # whole axis in one tile
    best_tile, best_padded = align, _round_up(n, align)
    for t in range(align, max_tile + 1, align):
        padded = _round_up(n, t)
        if padded < best_padded or (padded == best_padded and t > best_tile):
            best_tile, best_padded = t, padded
    return best_tile


def _pick_mlp_rows(n_padded, fallback_tile, max_rows=2048):
    """Row tile for the MLP kernels, decoupled from the matmul tiling.

    Must divide n_padded; prefers large tiles (fewer grid steps, better VPU
    utilization for the erf-heavy MLP).  `fallback_tile` (the matmul tile)
    always divides n_padded, so this never fails.
    """
    if n_padded <= max_rows:
        return n_padded
    for mult in range(max_rows // fallback_tile, 1, -1):
        cand = mult * fallback_tile
        if n_padded % cand == 0:
            return cand
    return fallback_tile


# ---------------------------------------------------------------------------
# Wrappers
# ---------------------------------------------------------------------------
def mlp_forward(v, ws, bs, *, tile_rows, transpose_out=False):
    """Run one MLP over every row of v (shape (N, 1), N % tile_rows == 0)."""
    n = v.shape[0]
    assert n % tile_rows == 0

    in_specs = [pl.BlockSpec((tile_rows, INPUT_SIZE), lambda i: (i, 0))]
    in_specs += [_replicated_spec(w.shape) for w in ws]
    in_specs += [_replicated_spec(b.shape) for b in bs]

    if transpose_out:
        kernel = _mlp_t_kernel
        out_shape = jax.ShapeDtypeStruct((OUTPUT_SIZE, n), jnp.float32)
        out_spec = pl.BlockSpec((OUTPUT_SIZE, tile_rows), lambda i: (0, i))
    else:
        kernel = _mlp_kernel
        out_shape = jax.ShapeDtypeStruct((n, OUTPUT_SIZE), jnp.float32)
        out_spec = pl.BlockSpec((tile_rows, OUTPUT_SIZE), lambda i: (i, 0))

    # Replicated weight blocks are DMA'd once, not per grid step.
    cost = pl.CostEstimate(
        flops=n * _MLP_FLOPS_PER_ROW,
        transcendentals=n * _GELU_PER_ROW,
        bytes_accessed=4 * (n * (INPUT_SIZE + OUTPUT_SIZE) + _PARAM_ELEMS),
    )
    return pl.pallas_call(
        kernel,
        out_shape=out_shape,
        grid=(n // tile_rows,),
        in_specs=in_specs,
        out_specs=out_spec,
        compiler_params=pltpu.CompilerParams(
            dimension_semantics=("parallel",),
            vmem_limit_bytes=_VMEM_LIMIT_MLP,
        ),
        cost_estimate=cost,
    )(v, *ws, *bs)


def _tiled_matmul(f1, f2t, *, tm, tn):
    """u = f1 @ f2t over a fully parallel 2-D grid (megacore-shardable)."""
    nx_p = f1.shape[0]
    ny_p = f2t.shape[1]
    grid = (nx_p // tm, ny_p // tn)

    cost = pl.CostEstimate(
        flops=2 * nx_p * OUTPUT_SIZE * ny_p,
        transcendentals=0,
        bytes_accessed=4 * (
            nx_p * OUTPUT_SIZE * grid[1]        # f1 tile re-read per j
            + OUTPUT_SIZE * ny_p * grid[0]      # f2T tile re-read per i
            + nx_p * ny_p                       # output write
        ),
    )
    return pl.pallas_call(
        _matmul_kernel,
        out_shape=jax.ShapeDtypeStruct((nx_p, ny_p), jnp.float32),
        grid=grid,
        in_specs=[
            pl.BlockSpec((tm, OUTPUT_SIZE), lambda i, j: (i, 0)),
            pl.BlockSpec((OUTPUT_SIZE, tn), lambda i, j: (0, j)),
        ],
        out_specs=pl.BlockSpec((tm, tn), lambda i, j: (i, j)),
        compiler_params=pltpu.CompilerParams(
            dimension_semantics=("parallel", "parallel"),
            vmem_limit_bytes=_VMEM_LIMIT_MATMUL,
        ),
        cost_estimate=cost,
    )(f1, f2t)


def combined_forward(x, y, params, *, tm=1024, tn=2048):
    """u = MLP1(x) @ MLP2(y).T, matching the PyTorch `Combined.forward`."""
    w1 = list(params[0:N_LIN])
    b1 = list(params[N_LIN:2 * N_LIN])
    w2 = list(params[2 * N_LIN:3 * N_LIN])
    b2 = list(params[3 * N_LIN:4 * N_LIN])

    nx = x.shape[0]
    ny = y.shape[0]

    # Tile selection: tm multiple of 8, tn multiple of 128 (lane-dense output);
    # the chooser minimizes padding waste for non-aligned point clouds.
    tm = _pick_matmul_tile(nx, tm, 8)
    tn = _pick_matmul_tile(ny, tn, 128)
    nx_p = _round_up(nx, tm)
    ny_p = _round_up(ny, tn)

    x_p = jnp.pad(x, ((0, nx_p - nx), (0, 0))) if nx_p != nx else x
    y_p = jnp.pad(y, ((0, ny_p - ny), (0, 0))) if ny_p != ny else y

    # Branch networks evaluated exactly once each, with their own row tiling.
    r1 = _pick_mlp_rows(nx_p, tm)
    r2 = _pick_mlp_rows(ny_p, tn)
    f1 = mlp_forward(x_p, w1, b1, tile_rows=r1)                       # (nx_p, 256)
    f2t = mlp_forward(y_p, w2, b2, tile_rows=r2, transpose_out=True)  # (256, ny_p)

    u_full = _tiled_matmul(f1, f2t, tm=tm, tn=tn)
    return u_full[:nx, :ny]


# ---------------------------------------------------------------------------
# Deterministic parameter construction (synthetic, PyTorch-Linear shapes).
# ---------------------------------------------------------------------------
def init_mlp_params(key):
    ws, bs = [], []
    for fan_in, fan_out in zip(_SIZES[:-1], _SIZES[1:]):
        key, kw, kb = jax.random.split(key, 3)
        bound = 1.0 / math.sqrt(fan_in)
        # stored as (in_features, out_features) so the kernel does X @ W
        ws.append(jax.random.uniform(
            kw, (fan_in, fan_out), jnp.float32, -bound, bound))
        bs.append(jax.random.uniform(
            kb, (1, fan_out), jnp.float32, -bound, bound))
    return ws, bs, key


def reference_forward(x, y, params):
    """Pure-JAX reference matching the PyTorch module."""
    w1 = params[0:N_LIN]
    b1 = params[N_LIN:2 * N_LIN]
    w2 = params[2 * N_LIN:3 * N_LIN]
    b2 = params[3 * N_LIN:4 * N_LIN]

    def mlp(v, ws, bs):
        h = v
        for w, b in zip(ws[:-1], bs[:-1]):
            h = jax.nn.gelu(h @ w + b, approximate=False)
        return h @ ws[-1] + bs[-1]

    f1 = mlp(x, w1, b1)
    f2 = mlp(y, w2, b2)
    return f1 @ f2.T


if __name__ == "__main__":
    key = jax.random.PRNGKey(0)
    w1, b1, key = init_mlp_params(key)
    w2, b2, key = init_mlp_params(key)
    params = [*w1, *b1, *w2, *b2]  # 20 tensors

    # Small collocation-point shapes consistent with the module (1-D coords
    # fed as (N, 1) columns).  Deliberately NOT tile-aligned to exercise the
    # pad-and-slice path.
    key, kx, ky = jax.random.split(key, 3)
    nx, ny = 48, 200
    x = jax.random.uniform(kx, (nx, INPUT_SIZE), jnp.float32, -1.0, 1.0)
    y = jax.random.uniform(ky, (ny, INPUT_SIZE), jnp.float32, 0.0, 1.0)

    u = combined_forward(x, y, params)
    u = jax.block_until_ready(u)

    u_ref = reference_forward(x, y, params)
    assert u.shape == (nx, ny)
    assert jnp.allclose(u, u_ref, rtol=1e-3, atol=1e-3), (
        "Pallas output mismatch vs. pure-JAX reference"
    )

    print("KERNEL_OK")
</pallas_src>

<mosaic_0001>
module attributes {stable_mosaic.version = 11 : i64} {
  func.func @_mlp_kernel(%arg0: i32, %arg1: memref<48x1xf32, #tpu.memory_space<vmem>>, %arg2: memref<1x128xf32, #tpu.memory_space<vmem>>, %arg3: memref<128x128xf32, #tpu.memory_space<vmem>>, %arg4: memref<128x128xf32, #tpu.memory_space<vmem>>, %arg5: memref<128x128xf32, #tpu.memory_space<vmem>>, %arg6: memref<128x256xf32, #tpu.memory_space<vmem>>, %arg7: memref<1x128xf32, #tpu.memory_space<vmem>>, %arg8: memref<1x128xf32, #tpu.memory_space<vmem>>, %arg9: memref<1x128xf32, #tpu.memory_space<vmem>>, %arg10: memref<1x128xf32, #tpu.memory_space<vmem>>, %arg11: memref<1x256xf32, #tpu.memory_space<vmem>>, %arg12: memref<48x256xf32, #tpu.memory_space<vmem>>) attributes {dimension_semantics = [#tpu.dimension_semantics<parallel>], iteration_bounds = array<i64: 1>, scalar_prefetch = 0 : i64, scratch_operands = 0 : i64, tpu.core_type = #tpu.core_type<tc>, window_params = [{transform_indices = @transform_0, window_bounds = array<i64: 48, 1>}, {pipeline_mode = #tpu.pipeline_mode<synchronous>, transform_indices = @transform_1, window_bounds = array<i64: 1, 128>}, {pipeline_mode = #tpu.pipeline_mode<synchronous>, transform_indices = @transform_2, window_bounds = array<i64: 128, 128>}, {pipeline_mode = #tpu.pipeline_mode<synchronous>, transform_indices = @transform_3, window_bounds = array<i64: 128, 128>}, {pipeline_mode = #tpu.pipeline_mode<synchronous>, transform_indices = @transform_4, window_bounds = array<i64: 128, 128>}, {pipeline_mode = #tpu.pipeline_mode<synchronous>, transform_indices = @transform_5, window_bounds = array<i64: 128, 256>}, {pipeline_mode = #tpu.pipeline_mode<synchronous>, transform_indices = @transform_6, window_bounds = array<i64: 1, 128>}, {pipeline_mode = #tpu.pipeline_mode<synchronous>, transform_indices = @transform_7, window_bounds = array<i64: 1, 128>}, {pipeline_mode = #tpu.pipeline_mode<synchronous>, transform_indices = @transform_8, window_bounds = array<i64: 1, 128>}, {pipeline_mode = #tpu.pipeline_mode<synchronous>, transform_indices = @transform_9, window_bounds = array<i64: 1, 128>}, {pipeline_mode = #tpu.pipeline_mode<synchronous>, transform_indices = @transform_10, window_bounds = array<i64: 1, 256>}, {transform_indices = @transform_11, window_bounds = array<i64: 48, 256>}]} {
    %c0 = arith.constant 0 : index
    %c0_0 = arith.constant 0 : index
    %0 = vector.load %arg1[%c0, %c0_0] : memref<48x1xf32, #tpu.memory_space<vmem>>, vector<48x1xf32>
    %c0_1 = arith.constant 0 : index
    %c0_2 = arith.constant 0 : index
    %1 = vector.load %arg2[%c0_1, %c0_2] : memref<1x128xf32, #tpu.memory_space<vmem>>, vector<1x128xf32>
    %2 = vector.broadcast %0 : vector<48x1xf32> to vector<48x128xf32>
    %3 = vector.broadcast %1 : vector<1x128xf32> to vector<48x128xf32>
    %4 = arith.mulf %2, %3 : vector<48x128xf32>
    %c0_3 = arith.constant 0 : index
    %c0_4 = arith.constant 0 : index
    %5 = vector.load %arg7[%c0_3, %c0_4] : memref<1x128xf32, #tpu.memory_space<vmem>>, vector<1x128xf32>
    %6 = vector.broadcast %5 : vector<1x128xf32> to vector<48x128xf32>
    %7 = arith.addf %4, %6 : vector<48x128xf32>
    %cst = arith.constant 5.000000e-01 : f32
    %8 = vector.broadcast %cst : f32 to vector<48x128xf32>
    %9 = arith.mulf %8, %7 : vector<48x128xf32>
    %cst_5 = arith.constant 0.707106769 : f32
    %10 = vector.broadcast %cst_5 : f32 to vector<48x128xf32>
    %11 = arith.mulf %7, %10 : vector<48x128xf32>
    %12 = math.erf %11 : vector<48x128xf32>
    %cst_6 = arith.constant 1.000000e+00 : f32
    %13 = vector.broadcast %cst_6 : f32 to vector<48x128xf32>
    %14 = arith.addf %13, %12 : vector<48x128xf32>
    %15 = arith.mulf %9, %14 : vector<48x128xf32>
    %c0_7 = arith.constant 0 : index
    %c0_8 = arith.constant 0 : index
    %16 = vector.load %arg3[%c0_7, %c0_8] : memref<128x128xf32, #tpu.memory_space<vmem>>, vector<128x128xf32>
    %cst_9 = arith.constant dense<0.000000e+00> : vector<48x128xf32>
    %17 = tpu.matmul %15, %16, %cst_9 {dimension_numbers = #tpu.dot_dimension_numbers<[1], [0], [0], [1], [0, 0, 1, 1], [], []>} : vector<48x128xf32>, vector<128x128xf32>, vector<48x128xf32> -> vector<48x128xf32>
    %c0_10 = arith.constant 0 : index
    %c0_11 = arith.constant 0 : index
    %18 = vector.load %arg8[%c0_10, %c0_11] : memref<1x128xf32, #tpu.memory_space<vmem>>, vector<1x128xf32>
    %19 = vector.broadcast %18 : vector<1x128xf32> to vector<48x128xf32>
    %20 = arith.addf %17, %19 : vector<48x128xf32>
    %cst_12 = arith.constant 5.000000e-01 : f32
    %21 = vector.broadcast %cst_12 : f32 to vector<48x128xf32>
    %22 = arith.mulf %21, %20 : vector<48x128xf32>
    %cst_13 = arith.constant 0.707106769 : f32
    %23 = vector.broadcast %cst_13 : f32 to vector<48x128xf32>
    %24 = arith.mulf %20, %23 : vector<48x128xf32>
    %25 = math.erf %24 : vector<48x128xf32>
    %cst_14 = arith.constant 1.000000e+00 : f32
    %26 = vector.broadcast %cst_14 : f32 to vector<48x128xf32>
    %27 = arith.addf %26, %25 : vector<48x128xf32>
    %28 = arith.mulf %22, %27 : vector<48x128xf32>
    %c0_15 = arith.constant 0 : index
    %c0_16 = arith.constant 0 : index
    %29 = vector.load %arg4[%c0_15, %c0_16] : memref<128x128xf32, #tpu.memory_space<vmem>>, vector<128x128xf32>
    %cst_17 = arith.constant dense<0.000000e+00> : vector<48x128xf32>
    %30 = tpu.matmul %28, %29, %cst_17 {dimension_numbers = #tpu.dot_dimension_numbers<[1], [0], [0], [1], [0, 0, 1, 1], [], []>} : vector<48x128xf32>, vector<128x128xf32>, vector<48x128xf32> -> vector<48x128xf32>
    %c0_18 = arith.constant 0 : index
    %c0_19 = arith.constant 0 : index
    %31 = vector.load %arg9[%c0_18, %c0_19] : memref<1x128xf32, #tpu.memory_space<vmem>>, vector<1x128xf32>
    %32 = vector.broadcast %31 : vector<1x128xf32> to vector<48x128xf32>
    %33 = arith.addf %30, %32 : vector<48x128xf32>
    %cst_20 = arith.constant 5.000000e-01 : f32
    %34 = vector.broadcast %cst_20 : f32 to vector<48x128xf32>
    %35 = arith.mulf %34, %33 : vector<48x128xf32>
    %cst_21 = arith.constant 0.707106769 : f32
    %36 = vector.broadcast %cst_21 : f32 to vector<48x128xf32>
    %37 = arith.mulf %33, %36 : vector<48x128xf32>
    %38 = math.erf %37 : vector<48x128xf32>
    %cst_22 = arith.constant 1.000000e+00 : f32
    %39 = vector.broadcast %cst_22 : f32 to vector<48x128xf32>
    %40 = arith.addf %39, %38 : vector<48x128xf32>
    %41 = arith.mulf %35, %40 : vector<48x128xf32>
    %c0_23 = arith.constant 0 : index
    %c0_24 = arith.constant 0 : index
    %42 = vector.load %arg5[%c0_23, %c0_24] : memref<128x128xf32, #tpu.memory_space<vmem>>, vector<128x128xf32>
    %cst_25 = arith.constant dense<0.000000e+00> : vector<48x128xf32>
    %43 = tpu.matmul %41, %42, %cst_25 {dimension_numbers = #tpu.dot_dimension_numbers<[1], [0], [0], [1], [0, 0, 1, 1], [], []>} : vector<48x128xf32>, vector<128x128xf32>, vector<48x128xf32> -> vector<48x128xf32>
    %c0_26 = arith.constant 0 : index
    %c0_27 = arith.constant 0 : index
    %44 = vector.load %arg10[%c0_26, %c0_27] : memref<1x128xf32, #tpu.memory_space<vmem>>, vector<1x128xf32>
    %45 = vector.broadcast %44 : vector<1x128xf32> to vector<48x128xf32>
    %46 = arith.addf %43, %45 : vector<48x128xf32>
    %cst_28 = arith.constant 5.000000e-01 : f32
    %47 = vector.broadcast %cst_28 : f32 to vector<48x128xf32>
    %48 = arith.mulf %47, %46 : vector<48x128xf32>
    %cst_29 = arith.constant 0.707106769 : f32
    %49 = vector.broadcast %cst_29 : f32 to vector<48x128xf32>
    %50 = arith.mulf %46, %49 : vector<48x128xf32>
    %51 = math.erf %50 : vector<48x128xf32>
    %cst_30 = arith.constant 1.000000e+00 : f32
    %52 = vector.broadcast %cst_30 : f32 to vector<48x128xf32>
    %53 = arith.addf %52, %51 : vector<48x128xf32>
    %54 = arith.mulf %48, %53 : vector<48x128xf32>
    %c0_31 = arith.constant 0 : index
    %c0_32 = arith.constant 0 : index
    %55 = vector.load %arg6[%c0_31, %c0_32] : memref<128x256xf32, #tpu.memory_space<vmem>>, vector<128x256xf32>
    %cst_33 = arith.constant dense<0.000000e+00> : vector<48x256xf32>
    %56 = tpu.matmul %54, %55, %cst_33 {dimension_numbers = #tpu.dot_dimension_numbers<[1], [0], [0], [1], [0, 0, 1, 1], [], []>} : vector<48x128xf32>, vector<128x256xf32>, vector<48x256xf32> -> vector<48x256xf32>
    %c0_34 = arith.constant 0 : index
    %c0_35 = arith.constant 0 : index
    %57 = vector.load %arg11[%c0_34, %c0_35] : memref<1x256xf32, #tpu.memory_space<vmem>>, vector<1x256xf32>
    %58 = vector.broadcast %57 : vector<1x256xf32> to vector<48x256xf32>
    %59 = arith.addf %56, %58 : vector<48x256xf32>
    %c0_36 = arith.constant 0 : index
    %c0_37 = arith.constant 0 : index
    %60 = vector.load %arg12[%c0_36, %c0_37] : memref<48x256xf32, #tpu.memory_space<vmem>>, vector<48x256xf32>
    tpu.vector_store %arg12[%c0_36, %c0_37], %59 {strides = array<i32>} : memref<48x256xf32, #tpu.memory_space<vmem>>, vector<48x256xf32>,
    return
  }
  func.func @transform_0(%arg0: i32) -> (i32, i32) {
    %c0_i32 = arith.constant 0 : i32
    %c0_i32_0 = arith.constant 0 : i32
    return %arg0, %c0_i32 : i32, i32
  }
  func.func @transform_1(%arg0: i32) -> (i32, i32) {
    %c0_i32 = arith.constant 0 : i32
    %c0_i32_0 = arith.constant 0 : i32
    %c0_i32_1 = arith.constant 0 : i32
    return %c0_i32, %c0_i32_0 : i32, i32
  }
  func.func @transform_2(%arg0: i32) -> (i32, i32) {
    %c0_i32 = arith.constant 0 : i32
    %c0_i32_0 = arith.constant 0 : i32
    %c0_i32_1 = arith.constant 0 : i32
    return %c0_i32, %c0_i32_0 : i32, i32
  }
  func.func @transform_3(%arg0: i32) -> (i32, i32) {
    %c0_i32 = arith.constant 0 : i32
    %c0_i32_0 = arith.constant 0 : i32
    %c0_i32_1 = arith.constant 0 : i32
    return %c0_i32, %c0_i32_0 : i32, i32
  }
  func.func @transform_4(%arg0: i32) -> (i32, i32) {
    %c0_i32 = arith.constant 0 : i32
    %c0_i32_0 = arith.constant 0 : i32
    %c0_i32_1 = arith.constant 0 : i32
    return %c0_i32, %c0_i32_0 : i32, i32
  }
  func.func @transform_5(%arg0: i32) -> (i32, i32) {
    %c0_i32 = arith.constant 0 : i32
    %c0_i32_0 = arith.constant 0 : i32
    %c0_i32_1 = arith.constant 0 : i32
    return %c0_i32, %c0_i32_0 : i32, i32
  }
  func.func @transform_6(%arg0: i32) -> (i32, i32) {
    %c0_i32 = arith.constant 0 : i32
    %c0_i32_0 = arith.constant 0 : i32
    %c0_i32_1 = arith.constant 0 : i32
    return %c0_i32, %c0_i32_0 : i32, i32
  }
  func.func @transform_7(%arg0: i32) -> (i32, i32) {
    %c0_i32 = arith.constant 0 : i32
    %c0_i32_0 = arith.constant 0 : i32
    %c0_i32_1 = arith.constant 0 : i32
    return %c0_i32, %c0_i32_0 : i32, i32
  }
  func.func @transform_8(%arg0: i32) -> (i32, i32) {
    %c0_i32 = arith.constant 0 : i32
    %c0_i32_0 = arith.constant 0 : i32
    %c0_i32_1 = arith.constant 0 : i32
    return %c0_i32, %c0_i32_0 : i32, i32
  }
  func.func @transform_9(%arg0: i32) -> (i32, i32) {
    %c0_i32 = arith.constant 0 : i32
    %c0_i32_0 = arith.constant 0 : i32
    %c0_i32_1 = arith.constant 0 : i32
    return %c0_i32, %c0_i32_0 : i32, i32
  }
  func.func @transform_10(%arg0: i32) -> (i32, i32) {
    %c0_i32 = arith.constant 0 : i32
    %c0_i32_0 = arith.constant 0 : i32
    %c0_i32_1 = arith.constant 0 : i32
    return %c0_i32, %c0_i32_0 : i32, i32
  }
  func.func @transform_11(%arg0: i32) -> (i32, i32) {
    %c0_i32 = arith.constant 0 : i32
    %c0_i32_0 = arith.constant 0 : i32
    return %arg0, %c0_i32 : i32, i32
  }
}

</mosaic_0001>

<bundles_post_ra>
// kernel: tpu_custom_call.1
= control target key start
LH: loop header
LB: loop body
LE: loop exit
PB: predicated region body
PF: predicated region fallthrough
CT: control target
= control target key end

     0   :  { %16 = vsyncpa [#allocation3], 0  ;;  %s2573_s0 = inlined_call_operand.vmem [shape: f32[48,1], index: 0, kind: input, shape index: {}]   ;;  %s2574_s1 = inlined_call_operand.vmem [shape: f32[1,128], index: 1, kind: input, shape index: {}]   ;;  %s2575_s2 = inlined_call_operand.hbm [shape: f32[128,128], index: 2, kind: input, shape index: {}]   ;;  %s2576_s3 = inlined_call_operand.hbm [shape: f32[128,128], index: 3, kind: input, shape index: {}]   ;;  %s2577_s4 = inlined_call_operand.hbm [shape: f32[128,128], index: 4, kind: input, shape index: {}]   ;;  %s2578_s5 = inlined_call_operand.hbm [shape: f32[128,256], index: 5, kind: input, shape index: {}]   ;;  %s2579_s6 = inlined_call_operand.vmem [shape: f32[1,128], index: 6, kind: input, shape index: {}]   ;;  %s2580_s7 = inlined_call_operand.vmem [shape: f32[1,128], index: 7, kind: input, shape index: {}]   ;;  %s2581_s8 = inlined_call_operand.vmem [shape: f32[1,128], index: 8, kind: input, shape index: {}]   ;;  %s2582_s9 = inlined_call_operand.vmem [shape: f32[1,128], index: 9, kind: input, shape index: {}]   ;;  %s2583_s10 = inlined_call_operand.vmem [shape: f32[1,256], index: 10, kind: input, shape index: {}]   ;;  %s2584_s11 = inlined_call_operand.hbm [shape: f32[48,256], index: 11, kind: output, shape index: {}]  }
   0x1   :  { %17 = vsyncpa [#allocation6], 0 }
   0x2   :  { %18 = vsyncpa [#allocation9], 0 }
   0x3   :  { %19 = vsyncpa [#allocation4], 0  ;;  %s41_s19 = sshll.u32 %s2576_s3, 4  ;;  %s1770_s20 = smov [#allocation5]   ;;  %s42_s19 = int_to_ptr.hbm [resolvable:$true] %s41_s19 }
   0x4   :  { %s43_s21 = sshll.u32 %s1770_s20, 4  ;;  %s28_s24 = sshll.u32 %s2575_s2, 4  ;;  %s44_s21 = int_to_ptr.vmem [resolvable:$true] %s43_s21  ;;  %s29_s24 = int_to_ptr.hbm [resolvable:$true] %s28_s24 }
   0x5   :  { %s1771_s25 = smov 128   ;;  %s1772_s26 = smov 8  }
   0x6   :  { %49 = dma.hbm_to_vmem [thread:$0]  %s42_s19, 2048, %s44_s21, [#allocation6], %s1771_s25, %s1771_s25, %s1772_s26  }
   0x7   :  { %s1773_s27 = smov [#allocation2]   ;;  %s54_s12 = sshll.u32 %s2577_s4, 4  ;;  %s55_s12 = int_to_ptr.hbm [resolvable:$true] %s54_s12 }
   0x8   :  { %s30_s28 = sshll.u32 %s1773_s27, 4  ;;  %s67_s14 = sshll.u32 %s2578_s5, 4  ;;  %s31_s28 = int_to_ptr.vmem [resolvable:$true] %s30_s28  ;;  %s68_s14 = int_to_ptr.hbm [resolvable:$true] %s67_s14 }
   0x9   :  { %36 = dma.hbm_to_vmem [thread:$0]  %s29_s24, 2048, %s31_s28, [#allocation3], %s1771_s25, %s1771_s25, %s1772_s26  }
   0xa   :  { %s1774_s15 = smov [#allocation7]   ;;  %s1775_s2 = smov [#allocation8]  }
   0xb   :  { %s56_s16 = sshll.u32 %s1774_s15, 4  ;;  %s69_s17 = sshll.u32 %s1775_s2, 4  ;;  %s57_s16 = int_to_ptr.vmem [resolvable:$true] %s56_s16  ;;  %s70_s17 = int_to_ptr.vmem [resolvable:$true] %s69_s17 }
   0xc   :  { %62 = dma.hbm_to_vmem [thread:$0]  %s55_s12, 2048, %s57_s16, [#allocation6], %s1771_s25, %s1771_s25, %s1772_s26  }
   0xd   :  { %s1776_s18 = smov 256   ;;  %s1777_s19 = smov 16  }
   0xe   :  { %75 = dma.hbm_to_vmem [thread:$0]  %s68_s14, 4096, %s70_s17, [#allocation9], %s1776_s18, %s1776_s18, %s1777_s19  }
   0xf   :  { %1762 = dma.done.wait [#allocation3], 2048  }
  0x10   :  { %1763 = vsyncadd [#allocation3], 4294965248 }
  0x11   :  { %1764 = dma.done.wait [#allocation6], 4096  }
  0x12   :  { %1765 = vsyncadd [#allocation6], 4294963200 }
  0x13   :  { %1766 = dma.done.wait [#allocation9], 4096  }
  0x14   :  { %1767 = vsyncadd [#allocation9], 4294963200  ;;  %v1778_v0 = vmov 0   ;;  %v106_v1 = vld [vmem:[%s2573_s0 + $0x20] sm:$0xff]  ;;  %v104_v2 = vld [vmem:[%s2573_s0 + $0x10] sm:$0xff]  ;;  %s1505_s4 = sshll.u32 %s2584_s11, 4  ;;  %s1506_s4 = int_to_ptr.hbm [resolvable:$true] %s1505_s4 }
  0x15   :  { %1588 = vset.pattern.permute.xlu2 %v1778_v0  ;;  %1587 = vset.pattern.permute.xlu1 %v1778_v0  ;;  %v102_v3 = vld [vmem:[%s2573_s0] sm:$0xff]  ;;  %v107_v4 = vld [vmem:[%s2573_s0 + $0x28] sm:$0xff]  ;;  %v105_v5 = vld [vmem:[%s2573_s0 + $0x18] sm:$0xff] }
  0x16   :  { %1586 = vset.pattern.permute.xlu0 %v1778_v0  ;;  %131 = vperm.xlu2 %1588, %v106_v1   ;;  %v103_v6 = vld [vmem:[%s2573_s0 + $0x8] sm:$0xff]  ;;  %v437_v7 = vld [vmem:[#allocation2 + $0x78] sm:$0xff]  ;;  %v436_v8 = vld [vmem:[#allocation2 + $0x70] sm:$0xff] }
  0x17   :  { %121 = vperm.xlu1 %1587, %v104_v2   ;;  %111 = vperm.xlu0 %1586, %v102_v3   ;;  %v1876_v9 = vld [vmem:[%s2574_s1] ss:$0 sm:$0xff]  ;;  %v435_v10 = vld [vmem:[#allocation2 + $0x68] sm:$0xff]  ;;  %v433_v15 = vld [vmem:[#allocation2 + $0x58] sm:$0xff] }
  0x18   :  { %1544 = vmatpush.msra.mxu1 %v437_v7  ;;  %442 = vmatpush.msra.mxu0 %v437_v7  ;;  %v1881_v11 = vld [vmem:[%s2579_s6] ss:$0 sm:$0xff]  ;;  %v432_v17 = vld [vmem:[#allocation2 + $0x50] sm:$0xff]  ;;  %v431_v19 = vld [vmem:[#allocation2 + $0x48] sm:$0xff] }
  0x19   :  { %v434_v12 = vld [vmem:[#allocation2 + $0x60] sm:$0xff]  ;;  %v429_v25 = vld [vmem:[#allocation2 + $0x38] sm:$0xff]  ;;  %v428_v26 = vld [vmem:[#allocation2 + $0x30] sm:$0xff] }
  0x1a   :  { %1545 = vmatpush.msra.mxu1 %v436_v8  ;;  %443 = vmatpush.msra.mxu0 %v436_v8  ;;  %v430_v21 = vld [vmem:[#allocation2 + $0x40] sm:$0xff]  ;;  %v427_v28 = vld [vmem:[#allocation2 + $0x28] sm:$0xff]  ;;  %v425_v36 = vld [vmem:[#allocation2 + $0x18] sm:$0xff] }
  0x1b   :  { %v426_v32 = vld [vmem:[#allocation2 + $0x20] sm:$0xff]  ;;  %v424_v40 = vld [vmem:[#allocation2 + $0x10] sm:$0xff]  ;;  %v423_v43 = vld [vmem:[#allocation2 + $0x8] sm:$0xff] }
  0x1c   :  { %1546 = vmatpush.msra.mxu1 %v435_v10  ;;  %444 = vmatpush.msra.mxu0 %v435_v10  ;;  %v422_v48 = vld [vmem:[#allocation2] sm:$0xff] }
  0x1e   :  { %136 = vperm.xlu2 %1588, %v107_v4   ;;  %1547 = vmatpush.msra.mxu1 %v434_v12 }
  0x1f   :  { %126 = vperm.xlu1 %1587, %v105_v5   ;;  %116 = vperm.xlu0 %1586, %v103_v6  }
  0x20   :  { %445 = vmatpush.msra.mxu0 %v434_v12  ;;  %1548 = vmatpush.msra.mxu1 %v433_v15 }
  0x22   :  { %446 = vmatpush.msra.mxu0 %v433_v15  ;;  %1549 = vmatpush.msra.mxu1 %v432_v17 }
  0x24   :  { %447 = vmatpush.msra.mxu0 %v432_v17  ;;  %1550 = vmatpush.msra.mxu1 %v431_v19 }
  0x26   :  { %448 = vmatpush.msra.mxu0 %v431_v19  ;;  %1551 = vmatpush.msra.mxu1 %v430_v21 }
  0x28   :  { %449 = vmatpush.msra.mxu0 %v430_v21  ;;  %1552 = vmatpush.msra.mxu1 %v429_v25 }
  0x2a   :  { %450 = vmatpush.msra.mxu0 %v429_v25  ;;  %1553 = vmatpush.msra.mxu1 %v428_v26 }
  0x2c   :  { %451 = vmatpush.msra.mxu0 %v428_v26  ;;  %1554 = vmatpush.msra.mxu1 %v427_v28 }
  0x2e   :  { %452 = vmatpush.msra.mxu0 %v427_v28  ;;  %1555 = vmatpush.msra.mxu1 %v426_v32 }
  0x30   :  { %453 = vmatpush.msra.mxu0 %v426_v32  ;;  %1556 = vmatpush.msra.mxu1 %v425_v36 }
  0x32   :  { %454 = vmatpush.msra.mxu0 %v425_v36  ;;  %1557 = vmatpush.msra.mxu1 %v424_v40 }
  0x34   :  { %455 = vmatpush.msra.mxu0 %v424_v40  ;;  %1558 = vmatpush.msra.mxu1 %v423_v43 }
  0x36   :  { %456 = vmatpush.msra.mxu0 %v423_v43  ;;  %1559 = vmatpush.msra.mxu1 %v422_v48 }
  0x38   :  { %457 = vmatpush.msra.mxu0 %v422_v48 }
  0x70   :  { %v132_v13 = vpop.permute.xlu2 %131 }
  0x71   :  { %v146_v14 = vmul.f32 %v1876_v9, %v132_v13 }
  0x73   :  { %v1885_v16 = vadd.f32 %v1881_v11, %v146_v14 }
  0x75   :  { %v1888_v18 = vmul.f32 0.70710677, %v1885_v16 }
  0x77   :  { %v330_v20 = vmul.f32 %v1888_v18, %v1888_v18 }
  0x78   :  { %v137_v22 = vpop.permute.xlu2 %136 }
  0x79   :  { %v1892_v23 = vmin.f32 %v330_v20, 16.0  ;;  %v147_v24 = vmul.f32 %v1876_v9, %v137_v22 }
  0x7b   :  { %v1896_v27 = vadd.f32 %v1881_v11, %v147_v24  ;;  %v332_v29 = vmul.f32 2.1237322e-06, %v1892_v23  ;;  %v343_v30 = vmul.f32 3.8918573e-05, %v1892_v23 }
  0x7d   :  { %v1901_v31 = vmul.f32 0.70710677, %v1896_v27  ;;  %v333_v33 = vadd.f32 0.00028619796, %v332_v29  ;;  %v344_v34 = vadd.f32 0.001143296, %v343_v30 }
  0x7f   :  { %v370_v35 = vmul.f32 %v1901_v31, %v1901_v31  ;;  %v334_v37 = vmul.f32 %v333_v33, %v1892_v23  ;;  %v345_v38 = vmul.f32 %v344_v34, %v1892_v23 }
  0x81   :  { %v1907_v39 = vmin.f32 %v370_v35, 16.0  ;;  %v335_v41 = vadd.f32 0.0036580483, %v334_v37  ;;  %v346_v42 = vadd.f32 0.014752088, %v345_v38  ;;  %v1956_v35 = vmul.f32 0.5, %v1885_v16 }
  0x83   :  { %v336_v44 = vmul.f32 %v335_v41, %v1892_v23  ;;  %v372_v45 = vmul.f32 2.1237322e-06, %v1907_v39  ;;  %v383_v46 = vmul.f32 3.8918573e-05, %v1907_v39  ;;  %v347_v47 = vmul.f32 %v346_v42, %v1892_v23 }
  0x85   :  { %v373_v49 = vadd.f32 0.00028619796, %v372_v45  ;;  %v384_v50 = vadd.f32 0.001143296, %v383_v46  ;;  %v348_v51 = vadd.f32 0.112945676, %v347_v47 }
  0x86   :  { %v337_v52 = vadd.f32 0.05243302, %v336_v44 }
  0x87   :  { %v374_v53 = vmul.f32 %v373_v49, %v1907_v39  ;;  %v385_v54 = vmul.f32 %v384_v50, %v1907_v39  ;;  %v349_v56 = vmul.f32 %v348_v51, %v1892_v23 }
  0x88   :  { %v338_v0 = vmul.f32 %v337_v52, %v1892_v23 }
  0x89   :  { %v122_v55 = vpop.permute.xlu1 %121  ;;  %v112_v58 = vpop.permute.xlu0 %111  ;;  %v375_v59 = vadd.f32 0.0036580483, %v374_v53  ;;  %v350_v61 = vadd.f32 0.4994258, %v349_v56  ;;  %v386_v62 = vadd.f32 0.014752088, %v385_v54 }
  0x8a   :  { %v144_v57 = vmul.f32 %v1876_v9, %v122_v55  ;;  %v142_v60 = vmul.f32 %v1876_v9, %v112_v58  ;;  %v339_v13 = vadd.f32 0.18741608, %v338_v0 }
  0x8b   :  { %v376_v1 = vmul.f32 %v375_v59, %v1907_v39  ;;  %v351_v3 = vmul.f32 %v350_v61, %v1892_v23  ;;  %v387_v4 = vmul.f32 %v386_v62, %v1907_v39 }
  0x8c   :  { %v1919_v63 = vadd.f32 %v1881_v11, %v144_v57  ;;  %v1924_v2 = vadd.f32 %v1881_v11, %v142_v60  ;;  %v340_v28 = vmul.f32 %v339_v13, %v1892_v23 }
  0x8d   :  { %v377_v6 = vadd.f32 0.05243302, %v376_v1  ;;  %v352_v8 = vadd.f32 1.0, %v351_v3  ;;  %v388_v10 = vadd.f32 0.112945676, %v387_v4 }
  0x8e   :  { %v1929_v5 = vmul.f32 0.70710677, %v1919_v63  ;;  %v1932_v7 = vmul.f32 0.70710677, %v1924_v2  ;;  %v341_v41 = vadd.f32 1.1283791, %v340_v28 }
  0x8f   :  { %v378_v14 = vmul.f32 %v377_v6, %v1907_v39  ;;  %1594 = vrcp.f32 %v352_v8  ;;  %v389_v25 = vmul.f32 %v388_v10, %v1907_v39  ;;  %v364_v43 = vand.u32 2147483648, %v352_v8 }
  0x90   :  { %v250_v12 = vmul.f32 %v1929_v5, %v1929_v5  ;;  %v170_v15 = vmul.f32 %v1932_v7, %v1932_v7  ;;  %vm358_vm0 = vweird.f32 %v352_v8  ;;  %v342_v59 = vmul.f32 %v341_v41, %v1888_v18 }
  0x91   :  { %v127_v17 = vpop.permute.xlu1 %126  ;;  %v117_v20 = vpop.permute.xlu0 %116  ;;  %v379_v21 = vadd.f32 0.18741608, %v378_v14  ;;  %v390_v30 = vadd.f32 0.4994258, %v389_v25  ;;  %v365_v52 = vor.u32 1.1754944e-38, %v364_v43 }
  0x92   :  { %v145_v19 = vmul.f32 %v1876_v9, %v127_v17  ;;  %v1940_v22 = vmin.f32 %v170_v15, 16.0  ;;  %v143_v24 = vmul.f32 %v1876_v9, %v117_v20  ;;  %v1944_v26 = vmin.f32 %v250_v12, 16.0 }
  0x93   :  { %v380_v9 = vmul.f32 %v379_v21, %v1907_v39  ;;  %v391_v23 = vmul.f32 %v390_v30, %v1907_v39  ;;  %v362_v39 = vand.u32 2147483647, %v352_v8 }
  0x94   :  { %v1948_v29 = vadd.f32 %v1881_v11, %v143_v24  ;;  %v172_v32 = vmul.f32 2.1237322e-06, %v1940_v22  ;;  %v183_v33 = vmul.f32 3.8918573e-05, %v1940_v22  ;;  %v1953_v34 = vadd.f32 %v1881_v11, %v145_v19 }
  0x95   :  { %v1595_v36 = vpop.eup %1594  ;;  %v252_v44 = vmul.f32 2.1237322e-06, %v1944_v26  ;;  %v1966_v16 = vadd.f32 1.0, %v391_v23  ;;  %v381_v50 = vadd.f32 1.1283791, %v380_v9  ;;  %vm363_vm3 = vcmp.eq.f32.partialorder %v362_v39, 8.507059e+37 }
  0x96   :  { %v1960_v37 = vmul.f32 0.70710677, %v1948_v29  ;;  %v173_v38 = vadd.f32 0.00028619796, %v172_v32  ;;  %v184_v40 = vadd.f32 0.001143296, %v183_v33  ;;  %v354_v42 = vmul.f32 %v1595_v36, %v352_v8 }
  0x97   :  { %vm359_vm1 = vweird.f32 %v1595_v36  ;;  %v1971_v48 = vmul.f32 0.70710677, %v1953_v34  ;;  %1596 = vrcp.f32 %v1966_v16  ;;  %v253_v54 = vadd.f32 0.00028619796, %v252_v44 }
  0x98   :  { %v210_v11 = vmul.f32 %v1960_v37, %v1960_v37  ;;  %v174_v45 = vmul.f32 %v173_v38, %v1940_v22  ;;  %v185_v46 = vmul.f32 %v184_v40, %v1940_v22  ;;  %v355_v47 = vsub.f32 1.0, %v354_v42  ;;  %vm1976_vm2 = vmor %vm358_vm0, %vm359_vm1 }
  0x99   :  { %v290_v62 = vmul.f32 %v1971_v48, %v1971_v48  ;;  %v382_v0 = vmul.f32 %v381_v50, %v1901_v31  ;;  %v254_v8 = vmul.f32 %v253_v54, %v1944_v26  ;;  %v263_v10 = vmul.f32 3.8918573e-05, %v1944_v26 }
  0x9a   :  { %v1973_v49 = vmin.f32 %v210_v11, 16.0  ;;  %v356_v51 = vmul.f32 %v1595_v36, %v355_v47  ;;  %v186_v53 = vadd.f32 0.014752088, %v185_v46  ;;  %v175_v56 = vadd.f32 0.0036580483, %v174_v45 }
  0x9b   :  { %vm398_vm4 = vweird.f32 %v1966_v16  ;;  %v404_v19 = vand.u32 2147483648, %v1966_v16  ;;  %v402_v20 = vand.u32 2147483647, %v1966_v16  ;;  %v264_v32 = vadd.f32 0.001143296, %v263_v10 }
  0x9c   :  { %v212_v57 = vmul.f32 2.1237322e-06, %v1973_v49  ;;  %v223_v58 = vmul.f32 3.8918573e-05, %v1973_v49  ;;  %v357_v60 = vadd.f32 %v1595_v36, %v356_v51  ;;  %v187_v61 = vmul.f32 %v186_v53, %v1940_v22 }
  0x9d   :  { %v1597_v18 = vpop.eup %1596  ;;  %v176_v13 = vmul.f32 %v175_v56, %v1940_v22  ;;  %v1999_v33 = vmin.f32 %v290_v62, 16.0  ;;  %v405_v41 = vor.u32 1.1754944e-38, %v404_v19  ;;  %v265_v42 = vmul.f32 %v264_v32, %v1944_v26 }
  0x9e   :  { %v213_v1 = vadd.f32 0.00028619796, %v212_v57  ;;  %v224_v3 = vadd.f32 0.001143296, %v223_v58  ;;  %v361_v4 = vsel %vm1976_vm2, %v1595_v36, %v357_v60  ;;  %v188_v6 = vadd.f32 0.112945676, %v187_v61 }
  0x9f   :  { %v366_v12 = vsel %vm363_vm3, %v365_v52, %v361_v4  ;;  %v394_v31 = vmul.f32 %v1597_v18, %v1966_v16  ;;  %vm399_vm5 = vweird.f32 %v1597_v18  ;;  %v177_v9 = vadd.f32 0.05243302, %v176_v13 }
  0xa0   :  { %v214_v14 = vmul.f32 %v213_v1, %v1973_v49  ;;  %v225_v15 = vmul.f32 %v224_v3, %v1973_v49  ;;  %v367_v17 = vmul.f32 %v366_v12, %v342_v59  ;;  %v189_v21 = vmul.f32 %v188_v6, %v1940_v22  ;;  %vm2005_vm6 = vmor %vm398_vm4, %vm399_vm5 }
  0xa1   :  { %v395_v30 = vsub.f32 1.0, %v394_v31  ;;  %v255_v46 = vadd.f32 0.0036580483, %v254_v8  ;;  %vm403_vm7 = vcmp.eq.f32.partialorder %v402_v20, 8.507059e+37  ;;  %v266_v50 = vadd.f32 0.014752088, %v265_v42 }
  0xa2   :  { %v215_v24 = vadd.f32 0.0036580483, %v214_v14  ;;  %v226_v25 = vadd.f32 0.014752088, %v225_v15  ;;  %v1524_v28 = vclamps-f32 %v367_v17, 1.0  ;;  %v178_v51 = vmul.f32 %v177_v9, %v1940_v22 }
  0xa3   :  { %v190_v36 = vadd.f32 0.4994258, %v189_v21  ;;  %v396_v40 = vmul.f32 %v1597_v18, %v395_v30  ;;  %v267_v54 = vmul.f32 %v266_v50, %v1944_v26  ;;  %v256_v57 = vmul.f32 %v255_v46, %v1944_v26 }
  0xa4   :  { %v227_v23 = vmul.f32 %v226_v25, %v1973_v49  ;;  %v414_v38 = vadd.f32 1.0, %v1524_v28  ;;  %v216_v11 = vmul.f32 %v215_v24, %v1973_v49  ;;  %v292_v59 = vmul.f32 2.1237322e-06, %v1999_v33 }
  0xa5   :  { %v191_v44 = vmul.f32 %v190_v36, %v1940_v22  ;;  %v397_v39 = vadd.f32 %v1597_v18, %v396_v40  ;;  %v179_v60 = vadd.f32 0.18741608, %v178_v51  ;;  %v268_v61 = vadd.f32 0.112945676, %v267_v54 }
  0xa6   :  { %v228_v45 = vadd.f32 0.112945676, %v227_v23  ;;  %v420_v47 = vmul.f32 %v414_v38, %v1956_v35  ;;  %v217_v56 = vadd.f32 0.05243302, %v216_v11  ;;  %v163_v62 = vmul.f32 0.5, %v1896_v27 }
  0xa7   :  { %v192_v52 = vadd.f32 1.0, %v191_v44  ;;  %v401_v53 = vsel %vm2005_vm6, %v1597_v18, %v397_v39  ;;  %v257_v6 = vadd.f32 0.05243302, %v256_v57  ;;  %v269_v8 = vmul.f32 %v268_v61, %v1944_v26 }
  0xa8   :  { %v229_v16 = vmul.f32 %v228_v45, %v1973_v49  ;;  %470 = vmatmul.f32.vlgmr.msra.gmra.mxu1 %v420_v47  ;;  %v406_v55 = vsel %vm403_vm7, %v405_v41, %v401_v53  ;;  %v218_v4 = vmul.f32 %v217_v56, %v1973_v49  ;;  %v303_v10 = vmul.f32 3.8918573e-05, %v1999_v33 }
  0xa9   :  { %1598 = vrcp.f32 %v192_v52  ;;  %v407_v35 = vmul.f32 %v406_v55, %v382_v0  ;;  %v293_v0 = vadd.f32 0.00028619796, %v292_v59  ;;  %v180_v14 = vmul.f32 %v179_v60, %v1940_v22 }
  0xaa   :  { %v230_v58 = vadd.f32 0.4994258, %v229_v16  ;;  %v270_v15 = vadd.f32 0.4994258, %v269_v8  ;;  %v304_v17 = vadd.f32 0.001143296, %v303_v10  ;;  %v258_v20 = vmul.f32 %v257_v6, %v1944_v26 }
  0xab   :  { %v1525_v1 = vclamps-f32 %v407_v35, 1.0  ;;  %v219_v19 = vadd.f32 0.18741608, %v218_v4  ;;  %v294_v25 = vmul.f32 %v293_v0, %v1999_v33  ;;  %v181_v30 = vadd.f32 1.1283791, %v180_v14 }
  0xac   :  { %v231_v3 = vmul.f32 %v230_v58, %v1973_v49  ;;  %v271_v24 = vmul.f32 %v270_v15, %v1944_v26  ;;  %v305_v28 = vmul.f32 %v304_v17, %v1999_v33  ;;  %v202_v32 = vand.u32 2147483647, %v192_v52 }
  0xad   :  { %v415_v18 = vadd.f32 1.0, %v1525_v1  ;;  %v204_v9 = vand.u32 2147483648, %v192_v52  ;;  %v220_v38 = vmul.f32 %v219_v19, %v1973_v49  ;;  %v259_v40 = vadd.f32 0.18741608, %v258_v20 }
  0xae   :  { %v232_v12 = vadd.f32 1.0, %v231_v3  ;;  %v2029_v36 = vadd.f32 1.0, %v271_v24  ;;  %v306_v23 = vadd.f32 0.014752088, %v305_v28  ;;  %vm198_vm9 = vweird.f32 %v192_v52 }
  0xaf   :  { %v1599_v13 = vpop.eup %1598  ;;  %v421_v31 = vmul.f32 %v415_v18, %v163_v62  ;;  %v295_v42 = vadd.f32 0.0036580483, %v294_v25  ;;  %v205_v44 = vor.u32 1.1754944e-38, %v204_v9  ;;  %v182_v45 = vmul.f32 %v181_v30, %v1932_v7 }
  0xb0   :  { %v194_v27 = vmul.f32 %v1599_v13, %v192_v52  ;;  %1600 = vrcp.f32 %v232_v12  ;;  %vm199_vm8 = vweird.f32 %v1599_v13  ;;  %v307_v11 = vmul.f32 %v306_v23, %v1999_v33 }
  0xb1   :  { %473 = vmatmul.f32.gmra.mxu1 %v421_v31  ;;  %1602 = vrcp.f32 %v2029_v36  ;;  %vm200_vm10 = vmor %vm198_vm9, %vm199_vm8  ;;  %vm203_vm11 = vcmp.eq.f32.partialorder %v202_v32, 8.507059e+37  ;;  %v221_v50 = vadd.f32 1.1283791, %v220_v38  ;;  %v260_v49 = vmul.f32 %v259_v40, %v1944_v26 }
  0xb2   :  { %v195_v21 = vsub.f32 1.0, %v194_v27  ;;  %v308_v51 = vadd.f32 0.112945676, %v307_v11  ;;  %v296_v53 = vmul.f32 %v295_v42, %v1999_v33  ;;  %v242_v54 = vand.u32 2147483647, %v232_v12 }
  0xb3   :  { %v244_v55 = vand.u32 2147483648, %v232_v12  ;;  %v158_v35 = vmul.f32 0.5, %v1924_v2  ;;  %v222_v59 = vmul.f32 %v221_v50, %v1960_v37  ;;  %v261_v60 = vadd.f32 1.1283791, %v260_v49 }
  0xb4   :  { %v196_v22 = vmul.f32 %v1599_v13, %v195_v21  ;;  %v309_v56 = vmul.f32 %v308_v51, %v1999_v33  ;;  %vm238_vm13 = vweird.f32 %v232_v12  ;;  %v297_v3 = vadd.f32 0.05243302, %v296_v53 }
  0xb5   :  { %vm243_vm15 = vcmp.eq.f32.partialorder %v242_v54, 8.507059e+37  ;;  %v245_v4 = vor.u32 1.1754944e-38, %v244_v55  ;;  %v282_v18 = vand.u32 2147483647, %v2029_v36  ;;  %v284_v37 = vand.u32 2147483648, %v2029_v36 }
  0xb6   :  { %v197_v41 = vadd.f32 %v1599_v13, %v196_v22  ;;  %v1601_v43 = vpop.eup %1600  ;;  %v310_v61 = vadd.f32 0.4994258, %v309_v56  ;;  %vm278_vm1 = vweird.f32 %v2029_v36  ;;  %v262_v19 = vmul.f32 %v261_v60, %v1929_v5 }
  0xb7   :  { %v234_v47 = vmul.f32 %v1601_v43, %v232_v12  ;;  %v1603_v57 = vpop.eup %1602  ;;  %vm239_vm12 = vweird.f32 %v1601_v43  ;;  %v298_v12 = vmul.f32 %v297_v3, %v1999_v33  ;;  %v285_v27 = vor.u32 1.1754944e-38, %v284_v37 }
  0xb8   :  { %v201_v46 = vsel %vm200_vm10, %v1599_v13, %v197_v41  ;;  %v274_v26 = vmul.f32 %v1603_v57, %v2029_v36  ;;  %vm240_vm14 = vmor %vm238_vm13, %vm239_vm12  ;;  %v311_v8 = vmul.f32 %v310_v61, %v1999_v33  ;;  %vm279_vm0 = vweird.f32 %v1603_v57 }
  0xb9   :  { %v206_v39 = vsel %vm203_vm11, %v205_v44, %v201_v46  ;;  %v235_v52 = vsub.f32 1.0, %v234_v47  ;;  %vm280_vm2 = vmor %vm278_vm1, %vm279_vm0  ;;  %vm283_vm3 = vcmp.eq.f32.partialorder %v282_v18, 8.507059e+37  ;;  %v159_v21 = vmul.f32 0.5, %v1948_v29 }
  0xba   :  { %v207_v16 = vmul.f32 %v206_v39, %v182_v45  ;;  %v275_v6 = vsub.f32 1.0, %v274_v26  ;;  %v312_v14 = vadd.f32 1.0, %v311_v8  ;;  %v299_v28 = vadd.f32 0.18741608, %v298_v12  ;;  %v754_v12 = vld [vmem:[#allocation5 + $0x68] sm:$0xff] }
  0xbb   :  { %v236_v58 = vmul.f32 %v1601_v43, %v235_v52  ;;  %v160_v41 = vmul.f32 0.5, %v1919_v63  ;;  %v161_v63 = vmul.f32 0.5, %v1953_v34 }
  0xbc   :  { %v1520_v7 = vclamps-f32 %v207_v16, 1.0  ;;  %v276_v13 = vmul.f32 %v1603_v57, %v275_v6  ;;  %1604 = vrcp.f32 %v312_v14  ;;  %v300_v36 = vmul.f32 %v299_v28, %v1999_v33  ;;  %v2055_v16 = vld [vmem:[%s2580_s7] ss:$0 sm:$0xff] }
  0xbd   :  { %v237_v1 = vadd.f32 %v1601_v43, %v236_v58  ;;  %v324_v5 = vand.u32 2147483648, %v312_v14  ;;  %v322_v29 = vand.u32 2147483647, %v312_v14  ;;  %vm318_vm5 = vweird.f32 %v312_v14 }
  0xbe   :  { %v410_v62 = vadd.f32 1.0, %v1520_v7  ;;  %v277_v17 = vadd.f32 %v1603_v57, %v276_v13  ;;  %v301_v42 = vadd.f32 1.1283791, %v300_v36 }
  0xbf   :  { %v241_v10 = vsel %vm240_vm14, %v1601_v43, %v237_v1  ;;  %v325_v45 = vor.u32 1.1754944e-38, %v324_v5  ;;  %vm323_vm7 = vcmp.eq.f32.partialorder %v322_v29, 8.507059e+37 }
  0xc0   :  { %v416_v2 = vmul.f32 %v410_v62, %v158_v35  ;;  %v246_v0 = vsel %vm243_vm15, %v245_v4, %v241_v10  ;;  %v281_v20 = vsel %vm280_vm2, %v1603_v57, %v277_v17  ;;  %v302_v46 = vmul.f32 %v301_v42, %v1971_v48 }
  0xc1   :  { %v247_v15 = vmul.f32 %v246_v0, %v222_v59  ;;  %v286_v25 = vsel %vm283_vm3, %v285_v27, %v281_v20  ;;  %v755_v0 = vld [vmem:[#allocation5 + $0x70] sm:$0xff]  ;;  %v753_v20 = vld [vmem:[#allocation5 + $0x60] sm:$0xff] }
  0xc2   :  { %458 = vmatmul.f32.vlgmr.msra.gmra.mxu0 %v416_v2  ;;  %v287_v30 = vmul.f32 %v286_v25, %v262_v19  ;;  %v1605_v9 = vpop.eup %1604  ;;  %v756_v2 = vld [vmem:[#allocation5 + $0x78] sm:$0xff] }
  0xc3   :  { %v1521_v31 = vclamps-f32 %v247_v15, 1.0  ;;  %v314_v23 = vmul.f32 %v1605_v9, %v312_v14  ;;  %vm319_vm4 = vweird.f32 %v1605_v9  ;;  %761 = vmatpush.msrb.mxu1 %v756_v2  ;;  %v746_v2 = vld [vmem:[#allocation5 + $0x28] sm:$0xff] }
  0xc4   :  { %v1522_v22 = vclamps-f32 %v287_v30, 1.0  ;;  %vm320_vm6 = vmor %vm318_vm5, %vm319_vm4 }
  0xc5   :  { %v411_v24 = vadd.f32 1.0, %v1521_v31  ;;  %v315_v40 = vsub.f32 1.0, %v314_v23  ;;  %762 = vmatpush.msrb.mxu1 %v755_v0 }
  0xc6   :  { %v412_v38 = vadd.f32 1.0, %v1522_v22 }
  0xc7   :  { %v417_v32 = vmul.f32 %v411_v24, %v159_v21  ;;  %v316_v43 = vmul.f32 %v1605_v9, %v315_v40  ;;  %763 = vmatpush.msrb.mxu1 %v754_v12  ;;  %v751_v40 = vld [vmem:[#allocation5 + $0x50] sm:$0xff] }
  0xc8   :  { %v418_v44 = vmul.f32 %v412_v38, %v160_v41 }
  0xc9   :  { %v317_v11 = vadd.f32 %v1605_v9, %v316_v43  ;;  %764 = vmatpush.msrb.mxu1 %v753_v20 }
  0xca   :  { %461 = vmatmul.f32.gmra.mxu0 %v417_v32  ;;  %v752_v32 = vld [vmem:[#allocation5 + $0x58] sm:$0xff] }
  0xcb   :  { %v321_v47 = vsel %vm320_vm6, %v1605_v9, %v317_v11  ;;  %765 = vmatpush.msrb.mxu1 %v752_v32 }
  0xcc   :  { %v326_v33 = vsel %vm323_vm7, %v325_v45, %v321_v47 }
  0xcd   :  { %v327_v39 = vmul.f32 %v326_v33, %v302_v46  ;;  %766 = vmatpush.msrb.mxu1 %v751_v40 }
  0xcf   :  { %v1523_v50 = vclamps-f32 %v327_v39, 1.0 }
  0xd1   :  { %v413_v49 = vadd.f32 1.0, %v1523_v50  ;;  %v749_v50 = vld [vmem:[#allocation5 + $0x40] sm:$0xff] }
  0xd2   :  { %464 = vmatmul.f32.gmra.mxu0 %v418_v44  ;;  %v750_v44 = vld [vmem:[#allocation5 + $0x48] sm:$0xff] }
  0xd3   :  { %v419_v51 = vmul.f32 %v413_v49, %v161_v63  ;;  %767 = vmatpush.msrb.mxu1 %v750_v44 }
  0xd5   :  { %768 = vmatpush.msrb.mxu1 %v749_v50 }
  0xda   :  { %467 = vmatmul.f32.gmra.mxu0 %v419_v51 }
 0x125   :  { %v471_v52 = vpop.f32.mrf.mxu1 }
 0x126   :  { %v2058_v53 = vadd.f32 %v2055_v16, %v471_v52 }
 0x128   :  { %v2061_v48 = vmul.f32 0.70710677, %v2058_v53 }
 0x12a   :  { %v649_v55 = vmul.f32 %v2061_v48, %v2061_v48 }
 0x12c   :  { %v2068_v56 = vmin.f32 %v649_v55, 16.0  ;;  %v748_v55 = vld [vmem:[#allocation5 + $0x38] sm:$0xff] }
 0x12d   :  { %769 = vmatpush.msrb.mxu1 %v748_v55 }
 0x12e   :  { %v474_v54 = vpop.f32.mrf.mxu1  ;;  %v662_v59 = vmul.f32 3.8918573e-05, %v2068_v56  ;;  %v651_v12 = vmul.f32 2.1237322e-06, %v2068_v56 }
 0x12f   :  { %v2066_v34 = vadd.f32 %v2055_v16, %v474_v54 }
 0x130   :  { %v663_v1 = vadd.f32 0.001143296, %v662_v59 }
 0x131   :  { %v2071_v35 = vmul.f32 0.70710677, %v2066_v34 }
 0x132   :  { %v664_v13 = vmul.f32 %v663_v1, %v2068_v56 }
 0x133   :  { %v689_v60 = vmul.f32 %v2071_v35, %v2071_v35 }
 0x134   :  { %v665_v25 = vadd.f32 0.014752088, %v664_v13 }
 0x135   :  { %v2086_v3 = vmin.f32 %v689_v60, 16.0  ;;  %v747_v60 = vld [vmem:[#allocation5 + $0x30] sm:$0xff] }
 0x136   :  { %v666_v43 = vmul.f32 %v665_v25, %v2068_v56  ;;  %770 = vmatpush.msrb.mxu1 %v747_v60 }
 0x137   :  { %v702_v17 = vmul.f32 3.8918573e-05, %v2086_v3 }
 0x138   :  { %v667_v51 = vadd.f32 0.112945676, %v666_v43  ;;  %771 = vmatpush.msrb.mxu1 %v746_v2  ;;  %v691_v43 = vmul.f32 2.1237322e-06, %v2086_v3 }
 0x139   :  { %v703_v9 = vadd.f32 0.001143296, %v702_v17 }
 0x13b   :  { %v704_v11 = vmul.f32 %v703_v9, %v2086_v3 }
 0x13f   :  { %v459_v57 = vpop.f32.mrf.mxu0 }
 0x140   :  { %v2074_v7 = vadd.f32 %v2055_v16, %v459_v57 }
 0x142   :  { %v2077_v58 = vmul.f32 0.70710677, %v2074_v7 }
 0x144   :  { %v489_v26 = vmul.f32 %v2077_v58, %v2077_v58 }
 0x146   :  { %v2084_v61 = vmin.f32 %v489_v26, 16.0 }
 0x147   :  { %v462_v62 = vpop.f32.mrf.mxu0 }
 0x148   :  { %v491_v4 = vmul.f32 2.1237322e-06, %v2084_v61  ;;  %v502_v6 = vmul.f32 3.8918573e-05, %v2084_v61  ;;  %v2091_v8 = vadd.f32 %v2055_v16, %v462_v62  ;;  %v705_v62 = vadd.f32 0.014752088, %v704_v11 }
 0x149   :  { %v742_v11 = vld [vmem:[#allocation5 + $0x8] sm:$0xff] }
 0x14a   :  { %v492_v10 = vadd.f32 0.00028619796, %v491_v4  ;;  %v503_v18 = vadd.f32 0.001143296, %v502_v6  ;;  %v2094_v37 = vmul.f32 0.70710677, %v2091_v8 }
 0x14c   :  { %v493_v14 = vmul.f32 %v492_v10, %v2084_v61  ;;  %v504_v15 = vmul.f32 %v503_v18, %v2084_v61  ;;  %v529_v31 = vmul.f32 %v2094_v37, %v2094_v37  ;;  %v668_v18 = vmul.f32 %v667_v51, %v2068_v56 }
 0x14e   :  { %v494_v27 = vadd.f32 0.0036580483, %v493_v14  ;;  %v505_v19 = vadd.f32 0.014752088, %v504_v15  ;;  %v2102_v21 = vmin.f32 %v529_v31, 16.0  ;;  %v745_v14 = vld [vmem:[#allocation5 + $0x20] sm:$0xff]  ;;  %v706_v15 = vmul.f32 %v705_v62, %v2086_v3 }
 0x14f   :  { %v465_v24 = vpop.f32.mrf.mxu0  ;;  %v669_v20 = vadd.f32 0.4994258, %v668_v18  ;;  %772 = vmatpush.msrb.mxu1 %v745_v14 }
 0x150   :  { %v506_v28 = vmul.f32 %v505_v19, %v2084_v61  ;;  %v2106_v30 = vadd.f32 %v2055_v16, %v465_v24  ;;  %v495_v22 = vmul.f32 %v494_v27, %v2084_v61  ;;  %v531_v36 = vmul.f32 2.1237322e-06, %v2102_v21  ;;  %v744_v19 = vld [vmem:[#allocation5 + $0x18] sm:$0xff] }
 0x151   :  { %v542_v23 = vmul.f32 3.8918573e-05, %v2102_v21  ;;  %773 = vmatpush.msrb.mxu1 %v744_v19 }
 0x152   :  { %v507_v38 = vadd.f32 0.112945676, %v506_v28  ;;  %v532_v41 = vadd.f32 0.00028619796, %v531_v36  ;;  %v2112_v5 = vmul.f32 0.70710677, %v2106_v30 }
 0x153   :  { %v543_v42 = vadd.f32 0.001143296, %v542_v23  ;;  %v496_v45 = vadd.f32 0.05243302, %v495_v22  ;;  %v743_v22 = vld [vmem:[#allocation5 + $0x10] sm:$0xff] }
 0x154   :  { %v508_v29 = vmul.f32 %v507_v38, %v2084_v61  ;;  %v533_v46 = vmul.f32 %v532_v41, %v2102_v21  ;;  %v569_v47 = vmul.f32 %v2112_v5, %v2112_v5  ;;  %v707_v36 = vadd.f32 0.112945676, %v706_v15  ;;  %774 = vmatpush.msrb.mxu1 %v743_v22 }
 0x155   :  { %v544_v33 = vmul.f32 %v543_v42, %v2102_v21  ;;  %v497_v57 = vmul.f32 %v496_v45, %v2084_v61  ;;  %v652_v38 = vadd.f32 0.00028619796, %v651_v12 }
 0x156   :  { %v509_v39 = vadd.f32 0.4994258, %v508_v29  ;;  %v2121_v63 = vmin.f32 %v569_v47, 16.0  ;;  %v534_v54 = vadd.f32 0.0036580483, %v533_v46  ;;  %775 = vmatpush.msrb.mxu1 %v742_v11 }
 0x157   :  { %v545_v49 = vadd.f32 0.014752088, %v544_v33  ;;  %v468_v59 = vpop.f32.mrf.mxu0  ;;  %v498_v13 = vadd.f32 0.18741608, %v497_v57  ;;  %v653_v62 = vmul.f32 %v652_v38, %v2068_v56 }
 0x158   :  { %v510_v52 = vmul.f32 %v509_v39, %v2084_v61  ;;  %v2129_v4 = vadd.f32 %v2055_v16, %v468_v59  ;;  %v571_v6 = vmul.f32 2.1237322e-06, %v2121_v63  ;;  %v535_v0 = vmul.f32 %v534_v54, %v2102_v21 }
 0x159   :  { %v546_v26 = vmul.f32 %v545_v49, %v2102_v21  ;;  %v582_v31 = vmul.f32 3.8918573e-05, %v2121_v63  ;;  %v499_v9 = vmul.f32 %v498_v13, %v2084_v61  ;;  %v670_v61 = vmul.f32 %v669_v20, %v2068_v56  ;;  %v741_v49 = vld [vmem:[#allocation5] sm:$0xff] }
 0x15a   :  { %v2126_v1 = vadd.f32 1.0, %v510_v52  ;;  %v2138_v16 = vmul.f32 0.70710677, %v2129_v4  ;;  %v572_v27 = vadd.f32 0.00028619796, %v571_v6  ;;  %v708_v52 = vmul.f32 %v707_v36, %v2086_v3  ;;  %776 = vmatpush.msrb.mxu1 %v741_v49 }
 0x15b   :  { %v547_v10 = vadd.f32 0.112945676, %v546_v26  ;;  %v536_v24 = vadd.f32 0.05243302, %v535_v0  ;;  %v583_v32 = vadd.f32 0.001143296, %v582_v31 }
 0x15c   :  { %1606 = vrcp.f32 %v2126_v1  ;;  %v609_v25 = vmul.f32 %v2138_v16, %v2138_v16  ;;  %v573_v44 = vmul.f32 %v572_v27, %v2121_v63  ;;  %v500_v39 = vadd.f32 1.1283791, %v499_v9 }
 0x15d   :  { %v548_v17 = vmul.f32 %v547_v10, %v2102_v21  ;;  %v584_v42 = vmul.f32 %v583_v32, %v2121_v63  ;;  %v537_v45 = vmul.f32 %v536_v24, %v2102_v21  ;;  %v521_v54 = vand.u32 2147483647, %v2126_v1 }
 0x15e   :  { %v2145_v40 = vmin.f32 %v609_v25, 16.0  ;;  %v523_v55 = vand.u32 2147483648, %v2126_v1  ;;  %v574_v60 = vadd.f32 0.0036580483, %v573_v44  ;;  %v2164_v10 = vadd.f32 1.0, %v670_v61 }
 0x15f   :  { %v549_v28 = vadd.f32 0.4994258, %v548_v17  ;;  %v585_v33 = vadd.f32 0.014752088, %v584_v42  ;;  %v538_v6 = vadd.f32 0.18741608, %v537_v45  ;;  %vm517_vm9 = vweird.f32 %v2126_v1 }
 0x160   :  { %v611_v46 = vmul.f32 2.1237322e-06, %v2145_v40  ;;  %v622_v51 = vmul.f32 3.8918573e-05, %v2145_v40  ;;  %v709_v13 = vadd.f32 0.4994258, %v708_v52  ;;  %v501_v14 = vmul.f32 %v500_v39, %v2077_v58 }
 0x161   :  { %v550_v41 = vmul.f32 %v549_v28, %v2102_v21  ;;  %v586_v26 = vmul.f32 %v585_v33, %v2121_v63  ;;  %v524_v15 = vor.u32 1.1754944e-38, %v523_v55  ;;  %vm522_vm11 = vcmp.eq.f32.partialorder %v521_v54, 8.507059e+37 }
 0x162   :  { %v1607_v23 = vpop.eup %1606  ;;  %v612_v57 = vadd.f32 0.00028619796, %v611_v46  ;;  %v623_v2 = vadd.f32 0.001143296, %v622_v51  ;;  %v575_v27 = vmul.f32 %v574_v60, %v2121_v63  ;;  %v654_v24 = vadd.f32 0.0036580483, %v653_v62 }
 0x163   :  { %v513_v29 = vmul.f32 %v1607_v23, %v2126_v1  ;;  %v2155_v47 = vadd.f32 1.0, %v550_v41  ;;  %vm518_vm8 = vweird.f32 %v1607_v23  ;;  %v587_v0 = vadd.f32 0.112945676, %v586_v26 }
 0x164   :  { %vm519_vm10 = vmor %vm517_vm9, %vm518_vm8  ;;  %v613_v12 = vmul.f32 %v612_v57, %v2145_v40  ;;  %v624_v17 = vmul.f32 %v623_v2, %v2145_v40  ;;  %v539_v1 = vmul.f32 %v538_v6, %v2102_v21  ;;  %v692_v32 = vadd.f32 0.00028619796, %v691_v43 }
 0x165   :  { %v514_v50 = vsub.f32 1.0, %v513_v29  ;;  %1608 = vrcp.f32 %v2155_v47  ;;  %v588_v19 = vmul.f32 %v587_v0, %v2121_v63  ;;  %v477_v58 = vmul.f32 0.5, %v2074_v7 }
 0x166   :  { %v625_v28 = vadd.f32 0.014752088, %v624_v17  ;;  %v614_v36 = vadd.f32 0.0036580483, %v613_v12  ;;  %1610 = vrcp.f32 %v2164_v10  ;;  %v576_v41 = vadd.f32 0.05243302, %v575_v27 }
 0x167   :  { %v515_v59 = vmul.f32 %v1607_v23, %v514_v50  ;;  %v589_v38 = vadd.f32 0.4994258, %v588_v19  ;;  %v710_v44 = vmul.f32 %v709_v13, %v2086_v3  ;;  %v540_v11 = vadd.f32 1.1283791, %v539_v1 }
 0x168   :  { %v563_v21 = vand.u32 2147483648, %v2155_v47  ;;  %v561_v46 = vand.u32 2147483647, %v2155_v47  ;;  %v655_v33 = vmul.f32 %v654_v24, %v2068_v56  ;;  %v615_v39 = vmul.f32 %v614_v36, %v2145_v40 }
 0x169   :  { %v516_v18 = vadd.f32 %v1607_v23, %v515_v59  ;;  %v590_v43 = vmul.f32 %v589_v38, %v2121_v63  ;;  %v577_v51 = vmul.f32 %v576_v41, %v2121_v63  ;;  %vm557_vm13 = vweird.f32 %v2155_v47 }
 0x16a   :  { %v693_v57 = vmul.f32 %v692_v32, %v2086_v3  ;;  %v564_v59 = vor.u32 1.1754944e-38, %v563_v21  ;;  %v2192_v60 = vadd.f32 1.0, %v710_v44  ;;  %v541_v26 = vmul.f32 %v540_v11, %v2094_v37 }
 0x16b   :  { %v520_v31 = vsel %vm519_vm10, %v1607_v23, %v516_v18  ;;  %v1609_v20 = vpop.eup %1608  ;;  %v626_v23 = vmul.f32 %v625_v28, %v2145_v40  ;;  %v2183_v50 = vadd.f32 1.0, %v590_v43  ;;  %vm562_vm15 = vcmp.eq.f32.partialorder %v561_v46, 8.507059e+37 }
 0x16c   :  { %v525_v25 = vsel %vm522_vm11, %v524_v15, %v520_v31  ;;  %v553_v22 = vmul.f32 %v1609_v20, %v2155_v47  ;;  %vm558_vm12 = vweird.f32 %v1609_v20  ;;  %v2188_v55 = vpop.eup %1610  ;;  %v656_v2 = vadd.f32 0.05243302, %v655_v33 }
 0x16d   :  { %v526_v9 = vmul.f32 %v525_v25, %v501_v14  ;;  %v627_v7 = vadd.f32 0.112945676, %v626_v23  ;;  %vm559_vm14 = vmor %vm557_vm13, %vm558_vm12  ;;  %1612 = vrcp.f32 %v2183_v50  ;;  %v616_v18 = vadd.f32 0.05243302, %v615_v39 }
 0x16e   :  { %v554_v29 = vsub.f32 1.0, %v553_v22  ;;  %v578_v47 = vadd.f32 0.18741608, %v577_v51  ;;  %v694_v15 = vadd.f32 0.0036580483, %v693_v57  ;;  %1614 = vrcp.f32 %v2192_v60 }
 0x16f   :  { %v1526_v42 = vclamps-f32 %v526_v9, 1.0  ;;  %v628_v49 = vmul.f32 %v627_v7, %v2145_v40  ;;  %v673_v37 = vmul.f32 %v2188_v55, %v2164_v10  ;;  %v657_v27 = vmul.f32 %v656_v2, %v2068_v56 }
 0x170   :  { %v555_v45 = vmul.f32 %v1609_v20, %v554_v29  ;;  %v478_v19 = vmul.f32 0.5, %v2091_v8  ;;  %v579_v24 = vmul.f32 %v578_v47, %v2121_v63  ;;  %v695_v28 = vmul.f32 %v694_v15, %v2086_v3 }
 0x171   :  { %v729_v61 = vadd.f32 1.0, %v1526_v42  ;;  %v629_v6 = vadd.f32 0.4994258, %v628_v49  ;;  %v674_v9 = vsub.f32 1.0, %v673_v37  ;;  %v658_v36 = vadd.f32 0.18741608, %v657_v27 }
 0x172   :  { %v556_v54 = vadd.f32 %v1609_v20, %v555_v45  ;;  %v603_v8 = vand.u32 2147483648, %v2183_v50  ;;  %v580_v23 = vadd.f32 1.1283791, %v579_v24  ;;  %v601_v63 = vand.u32 2147483647, %v2183_v50 }
 0x173   :  { %v735_v52 = vmul.f32 %v729_v61, %v477_v58  ;;  %v630_v14 = vmul.f32 %v629_v6, %v2145_v40  ;;  %v1613_v31 = vpop.eup %1612  ;;  %v696_v42 = vadd.f32 0.05243302, %v695_v28  ;;  %vm597_vm1 = vweird.f32 %v2183_v50 }
 0x174   :  { %v560_v62 = vsel %vm559_vm14, %v1609_v20, %v556_v54  ;;  %v617_v20 = vmul.f32 %v616_v18, %v2145_v40  ;;  %v593_v1 = vmul.f32 %v1613_v31, %v2183_v50  ;;  %v2208_v22 = vpop.eup %1614  ;;  %vm598_vm0 = vweird.f32 %v1613_v31 }
 0x175   :  { %777 = vmatmul.f32.vlgmr.msrb.gmra.mxu1 %v735_v52  ;;  %v565_v0 = vsel %vm562_vm15, %v564_v59, %v560_v62  ;;  %v2197_v17 = vadd.f32 1.0, %v630_v14  ;;  %v675_v11 = vmul.f32 %v2188_v55, %v674_v9  ;;  %v713_v21 = vmul.f32 %v2208_v22, %v2192_v60  ;;  %vm599_vm2 = vmor %vm597_vm1, %vm598_vm0 }
 0x176   :  { %v566_v13 = vmul.f32 %v565_v0, %v541_v26  ;;  %v594_v58 = vsub.f32 1.0, %v593_v1  ;;  %v618_v38 = vadd.f32 0.18741608, %v617_v20  ;;  %v659_v43 = vmul.f32 %v658_v36, %v2068_v56 }
 0x177   :  { %1616 = vrcp.f32 %v2197_v17  ;;  %v604_v61 = vor.u32 1.1754944e-38, %v603_v8  ;;  %v581_v46 = vmul.f32 %v580_v23, %v2112_v5  ;;  %vm602_vm3 = vcmp.eq.f32.partialorder %v601_v63, 8.507059e+37 }
 0x178   :  { %v1527_v12 = vclamps-f32 %v566_v13, 1.0  ;;  %v595_v41 = vmul.f32 %v1613_v31, %v594_v58  ;;  %v619_v7 = vmul.f32 %v618_v38, %v2145_v40  ;;  %v683_v39 = vand.u32 2147483648, %v2164_v10 }
 0x179   :  { %v697_v50 = vmul.f32 %v696_v42, %v2086_v3  ;;  %vm678_vm4 = vweird.f32 %v2188_v55  ;;  %v643_v56 = vand.u32 2147483648, %v2197_v17  ;;  %v676_v40 = vadd.f32 %v2188_v55, %v675_v11 }
 0x17a   :  { %v730_v25 = vadd.f32 1.0, %v1527_v12  ;;  %v596_v44 = vadd.f32 %v1613_v31, %v595_v41  ;;  %v714_v54 = vsub.f32 1.0, %v713_v21  ;;  %v620_v57 = vadd.f32 1.1283791, %v619_v7  ;;  %v1075_v7 = vld [vmem:[#allocation7 + $0x78] sm:$0xff] }
 0x17b   :  { %v641_v5 = vand.u32 2147483647, %v2197_v17  ;;  %v660_v26 = vadd.f32 1.1283791, %v659_v43  ;;  %vm677_vm6 = vweird.f32 %v2164_v10  ;;  %v681_v6 = vand.u32 2147483647, %v2164_v10  ;;  %1080 = vmatpush.msra.mxu2 %v1075_v7 }
 0x17c   :  { %v736_v32 = vmul.f32 %v730_v25, %v478_v19  ;;  %v600_v33 = vsel %vm599_vm2, %v1613_v31, %v596_v44  ;;  %v698_v2 = vadd.f32 0.18741608, %v697_v50  ;;  %v479_v18 = vmul.f32 0.5, %v2106_v30  ;;  %vm679_vm8 = vmor %vm677_vm6, %vm678_vm4 }
 0x17d   :  { %v1617_v29 = vpop.eup %1616  ;;  %v605_v49 = vsel %vm602_vm3, %v604_v61, %v600_v33  ;;  %vm637_vm7 = vweird.f32 %v2197_v17  ;;  %v644_v13 = vor.u32 1.1754944e-38, %v643_v56  ;;  %v680_v14 = vsel %vm679_vm8, %v2188_v55, %v676_v40 }
 0x17e   :  { %780 = vmatmul.f32.gmra.mxu1 %v736_v32  ;;  %v633_v45 = vmul.f32 %v1617_v29, %v2197_v17  ;;  %v606_v52 = vmul.f32 %v605_v49, %v581_v46  ;;  %vm638_vm5 = vweird.f32 %v1617_v29  ;;  %v715_v15 = vmul.f32 %v2208_v22, %v714_v54  ;;  %v1072_v54 = vld [vmem:[#allocation7 + $0x60] sm:$0xff] }
 0x17f   :  { %vm639_vm9 = vmor %vm637_vm7, %vm638_vm5  ;;  %v621_v12 = vmul.f32 %v620_v57, %v2138_v16  ;;  %vm642_vm10 = vcmp.eq.f32.partialorder %v641_v5, 8.507059e+37  ;;  %v684_v10 = vor.u32 1.1754944e-38, %v683_v39  ;;  %vm682_vm11 = vcmp.eq.f32.partialorder %v681_v6, 8.507059e+37  ;;  %v1074_v39 = vld [vmem:[#allocation7 + $0x70] sm:$0xff] }
 0x180   :  { %v634_v51 = vsub.f32 1.0, %v633_v45  ;;  %v1528_v62 = vclamps-f32 %v606_v52, 1.0  ;;  %v661_v19 = vmul.f32 %v660_v26, %v2061_v48  ;;  %v699_v20 = vmul.f32 %v698_v2, %v2086_v3  ;;  %1081 = vmatpush.msra.mxu2 %v1074_v39  ;;  %v1073_v52 = vld [vmem:[#allocation7 + $0x68] sm:$0xff]  ;;  %v1071_v26 = vld [vmem:[#allocation7 + $0x58] sm:$0xff]  ;;  %v1070_v2 = vld [vmem:[#allocation7 + $0x50] sm:$0xff] }
 0x181   :  { %v685_v17 = vsel %vm682_vm11, %v684_v10, %v680_v14  ;;  %v716_v24 = vadd.f32 %v2208_v22, %v715_v15  ;;  %vm718_vm12 = vweird.f32 %v2208_v22  ;;  %v723_v16 = vand.u32 2147483648, %v2192_v60  ;;  %v1069_v14 = vld [vmem:[#allocation7 + $0x48] sm:$0xff]  ;;  %v1068_v10 = vld [vmem:[#allocation7 + $0x40] sm:$0xff] }
 0x182   :  { %v635_v59 = vmul.f32 %v1617_v29, %v634_v51  ;;  %v731_v47 = vadd.f32 1.0, %v1528_v62  ;;  %v686_v25 = vmul.f32 %v685_v17, %v661_v19  ;;  %vm717_vm13 = vweird.f32 %v2192_v60  ;;  %1082 = vmatpush.msra.mxu2 %v1073_v52 }
 0x183   :  { %v721_v1 = vand.u32 2147483647, %v2192_v60  ;;  %v480_v28 = vmul.f32 0.5, %v2129_v4  ;;  %vm719_vm14 = vmor %vm717_vm13, %vm718_vm12  ;;  %v700_v48 = vadd.f32 1.1283791, %v699_v20  ;;  %v724_v9 = vor.u32 1.1754944e-38, %v723_v16 }
 0x184   :  { %v636_v0 = vadd.f32 %v1617_v29, %v635_v59  ;;  %v737_v31 = vmul.f32 %v731_v47, %v479_v18  ;;  %v720_v3 = vsel %vm719_vm14, %v2208_v22, %v716_v24  ;;  %v1530_v36 = vclamps-f32 %v686_v25, 1.0  ;;  %v2250_v22 = vld [vmem:[%s2581_s8] ss:$0 sm:$0xff]  ;;  %1083 = vmatpush.msra.mxu2 %v1072_v54  ;;  %v1067_v20 = vld [vmem:[#allocation7 + $0x38] sm:$0xff] }
 0x185   :  { %vm722_vm15 = vcmp.eq.f32.partialorder %v721_v1, 8.507059e+37  ;;  %v701_v8 = vmul.f32 %v700_v48, %v2071_v35  ;;  %v481_v63 = vmul.f32 0.5, %v2058_v53  ;;  %v1066_v1 = vld [vmem:[#allocation7 + $0x30] sm:$0xff] }
 0x186   :  { %v640_v37 = vsel %vm639_vm9, %v1617_v29, %v636_v0  ;;  %783 = vmatmul.f32.gmra.mxu1 %v737_v31  ;;  %v725_v38 = vsel %vm722_vm15, %v724_v9, %v720_v3  ;;  %v733_v23 = vadd.f32 1.0, %v1530_v36  ;;  %v482_v29 = vmul.f32 0.5, %v2066_v34  ;;  %1084 = vmatpush.msra.mxu2 %v1071_v26 }
 0x187   :  { %v645_v30 = vsel %vm642_vm10, %v644_v13, %v640_v37  ;;  %v726_v41 = vmul.f32 %v725_v38, %v701_v8  ;;  %v1064_v38 = vld [vmem:[#allocation7 + $0x20] sm:$0xff] }
 0x188   :  { %v646_v27 = vmul.f32 %v645_v30, %v621_v12  ;;  %v739_v60 = vmul.f32 %v733_v23, %v481_v63  ;;  %1085 = vmatpush.msra.mxu2 %v1070_v2 }
 0x189   :  { %v1531_v42 = vclamps-f32 %v726_v41, 1.0 }
 0x18a   :  { %v1529_v55 = vclamps-f32 %v646_v27, 1.0  ;;  %1086 = vmatpush.msra.mxu2 %v1069_v14 }
 0x18b   :  { %v734_v4 = vadd.f32 1.0, %v1531_v42  ;;  %v1063_v42 = vld [vmem:[#allocation7 + $0x18] sm:$0xff] }
 0x18c   :  { %v732_v32 = vadd.f32 1.0, %v1529_v55  ;;  %1087 = vmatpush.msra.mxu2 %v1068_v10 }
 0x18d   :  { %v740_v44 = vmul.f32 %v734_v4, %v482_v29 }
 0x18e   :  { %v738_v58 = vmul.f32 %v732_v32, %v480_v28  ;;  %1088 = vmatpush.msra.mxu2 %v1067_v20 }
 0x190   :  { %786 = vmatmul.f32.gmra.mxu1 %v738_v58  ;;  %1089 = vmatpush.msra.mxu2 %v1066_v1  ;;  %v1065_v58 = vld [vmem:[#allocation7 + $0x28] sm:$0xff] }
 0x192   :  { %1090 = vmatpush.msra.mxu2 %v1065_v58 }
 0x194   :  { %1091 = vmatpush.msra.mxu2 %v1064_v38 }
 0x196   :  { %1092 = vmatpush.msra.mxu2 %v1063_v42 }
 0x198   :  { %789 = vmatmul.f32.gmra.mxu1 %v739_v60 }
 0x1a0   :  { %792 = vmatmul.f32.gmra.mxu1 %v740_v44 }
 0x1f2   :  { %v778_v11 = vpop.f32.mrf.mxu1 }
 0x1f3   :  { %v2253_v35 = vadd.f32 %v2250_v22, %v778_v11 }
 0x1f5   :  { %v2256_v21 = vmul.f32 0.70710677, %v2253_v35 }
 0x1f7   :  { %v808_v53 = vmul.f32 %v2256_v21, %v2256_v21 }
 0x1f9   :  { %v2260_v43 = vmin.f32 %v808_v53, 16.0 }
 0x1fb   :  { %v810_v34 = vmul.f32 2.1237322e-06, %v2260_v43  ;;  %v821_v61 = vmul.f32 3.8918573e-05, %v2260_v43  ;;  %v781_v45 = vpop.f32.mrf.mxu1 }
 0x1fc   :  { %v2265_v33 = vadd.f32 %v2250_v22, %v781_v45 }
 0x1fd   :  { %v811_v46 = vadd.f32 0.00028619796, %v810_v34  ;;  %v822_v50 = vadd.f32 0.001143296, %v821_v61  ;;  %v1062_v34 = vld [vmem:[#allocation7 + $0x10] sm:$0xff] }
 0x1fe   :  { %v2269_v51 = vmul.f32 0.70710677, %v2265_v33  ;;  %1093 = vmatpush.msra.mxu2 %v1062_v34 }
 0x1ff   :  { %v812_v49 = vmul.f32 %v811_v46, %v2260_v43  ;;  %v823_v56 = vmul.f32 %v822_v50, %v2260_v43 }
 0x200   :  { %v848_v40 = vmul.f32 %v2269_v51, %v2269_v51 }
 0x201   :  { %v824_v57 = vadd.f32 0.014752088, %v823_v56  ;;  %v813_v59 = vadd.f32 0.0036580483, %v812_v49  ;;  %v1061_v49 = vld [vmem:[#allocation7 + $0x8] sm:$0xff] }
 0x202   :  { %v2274_v5 = vmin.f32 %v848_v40, 16.0  ;;  %1094 = vmatpush.msra.mxu2 %v1061_v49 }
 0x203   :  { %v825_v62 = vmul.f32 %v824_v57, %v2260_v43  ;;  %v814_v18 = vmul.f32 %v813_v59, %v2260_v43  ;;  %v784_v30 = vpop.f32.mrf.mxu1  ;;  %v1060_v59 = vld [vmem:[#allocation7] sm:$0xff] }
 0x204   :  { %v850_v6 = vmul.f32 2.1237322e-06, %v2274_v5  ;;  %v861_v47 = vmul.f32 3.8918573e-05, %v2274_v5  ;;  %v2284_v19 = vadd.f32 %v2250_v22, %v784_v30  ;;  %1095 = vmatpush.msra.mxu2 %v1060_v59 }
 0x205   :  { %v826_v0 = vadd.f32 0.112945676, %v825_v62  ;;  %v815_v31 = vadd.f32 0.05243302, %v814_v18 }
 0x206   :  { %v851_v13 = vadd.f32 0.00028619796, %v850_v6  ;;  %v862_v12 = vadd.f32 0.001143296, %v861_v47  ;;  %v2288_v25 = vmul.f32 0.70710677, %v2284_v19 }
 0x207   :  { %v827_v15 = vmul.f32 %v826_v0, %v2260_v43  ;;  %v816_v28 = vmul.f32 %v815_v31, %v2260_v43 }
 0x208   :  { %v852_v37 = vmul.f32 %v851_v13, %v2274_v5  ;;  %v863_v17 = vmul.f32 %v862_v12, %v2274_v5  ;;  %v888_v3 = vmul.f32 %v2288_v25, %v2288_v25 }
 0x209   :  { %v828_v27 = vadd.f32 0.4994258, %v827_v15  ;;  %v817_v23 = vadd.f32 0.18741608, %v816_v28 }
 0x20a   :  { %v853_v24 = vadd.f32 0.0036580483, %v852_v37  ;;  %v864_v16 = vadd.f32 0.014752088, %v863_v17  ;;  %v2298_v36 = vmin.f32 %v888_v3, 16.0 }
 0x20b   :  { %v829_v55 = vmul.f32 %v828_v27, %v2260_v43  ;;  %v818_v61 = vmul.f32 %v817_v23, %v2260_v43 }
 0x20c   :  { %v865_v48 = vmul.f32 %v864_v16, %v2274_v5  ;;  %v854_v9 = vmul.f32 %v853_v24, %v2274_v5  ;;  %v890_v63 = vmul.f32 2.1237322e-06, %v2298_v36  ;;  %v901_v44 = vmul.f32 3.8918573e-05, %v2298_v36 }
 0x20d   :  { %v2291_v32 = vadd.f32 1.0, %v829_v55  ;;  %v787_v41 = vpop.f32.mrf.mxu1  ;;  %v819_v62 = vadd.f32 1.1283791, %v818_v61 }
 0x20e   :  { %v866_v8 = vadd.f32 0.112945676, %v865_v48  ;;  %v2302_v60 = vadd.f32 %v2250_v22, %v787_v41  ;;  %v855_v29 = vadd.f32 0.05243302, %v854_v9  ;;  %v891_v11 = vadd.f32 0.00028619796, %v890_v63 }
 0x20f   :  { %1618 = vrcp.f32 %v2291_v32  ;;  %v902_v46 = vadd.f32 0.001143296, %v901_v44  ;;  %v842_v2 = vand.u32 2147483648, %v2291_v32  ;;  %v840_v14 = vand.u32 2147483647, %v2291_v32 }
 0x210   :  { %v867_v4 = vmul.f32 %v866_v8, %v2274_v5  ;;  %v2307_v53 = vmul.f32 0.70710677, %v2302_v60  ;;  %v892_v39 = vmul.f32 %v891_v11, %v2298_v36  ;;  %v856_v54 = vmul.f32 %v855_v29, %v2274_v5 }
 0x211   :  { %v903_v40 = vmul.f32 %v902_v46, %v2298_v36  ;;  %vm836_vm1 = vweird.f32 %v2291_v32  ;;  %v843_v30 = vor.u32 1.1754944e-38, %v842_v2  ;;  %v820_v17 = vmul.f32 %v819_v62, %v2256_v21 }
 0x212   :  { %v868_v45 = vadd.f32 0.4994258, %v867_v4  ;;  %v928_v50 = vmul.f32 %v2307_v53, %v2307_v53  ;;  %v893_v57 = vadd.f32 0.0036580483, %v892_v39  ;;  %v857_v15 = vadd.f32 0.18741608, %v856_v54 }
 0x213   :  { %v904_v0 = vadd.f32 0.014752088, %v903_v40  ;;  %vm841_vm3 = vcmp.eq.f32.partialorder %v840_v14, 8.507059e+37  ;;  %v796_v63 = vmul.f32 0.5, %v2253_v35 }
 0x214   :  { %v869_v56 = vmul.f32 %v868_v45, %v2274_v5  ;;  %v2317_v43 = vmin.f32 %v928_v50, 16.0  ;;  %v894_v12 = vmul.f32 %v893_v57, %v2298_v36  ;;  %v858_v28 = vmul.f32 %v857_v15, %v2274_v5 }
 0x215   :  { %v1619_v7 = vpop.eup %1618  ;;  %v790_v6 = vpop.f32.mrf.mxu1  ;;  %v905_v27 = vmul.f32 %v904_v0, %v2298_v36 }
 0x216   :  { %v832_v52 = vmul.f32 %v1619_v7, %v2291_v32  ;;  %v2320_v18 = vadd.f32 1.0, %v869_v56  ;;  %v2323_v47 = vadd.f32 %v2250_v22, %v790_v6  ;;  %vm837_vm0 = vweird.f32 %v1619_v7 }
 0x217   :  { %v930_v37 = vmul.f32 2.1237322e-06, %v2317_v43  ;;  %vm838_vm2 = vmor %vm836_vm1, %vm837_vm0  ;;  %v941_v24 = vmul.f32 3.8918573e-05, %v2317_v43  ;;  %v906_v1 = vadd.f32 0.112945676, %v905_v27 }
 0x218   :  { %v833_v26 = vsub.f32 1.0, %v832_v52  ;;  %1620 = vrcp.f32 %v2320_v18  ;;  %v2331_v31 = vmul.f32 0.70710677, %v2323_v47  ;;  %v895_v32 = vadd.f32 0.05243302, %v894_v12 }
 0x219   :  { %v931_v48 = vadd.f32 0.00028619796, %v930_v37  ;;  %v907_v21 = vmul.f32 %v906_v1, %v2298_v36  ;;  %v942_v41 = vadd.f32 0.001143296, %v941_v24  ;;  %v859_v5 = vadd.f32 1.1283791, %v858_v28 }
 0x21a   :  { %v834_v13 = vmul.f32 %v1619_v7, %v833_v26  ;;  %v968_v55 = vmul.f32 %v2331_v31, %v2331_v31  ;;  %v896_v29 = vmul.f32 %v895_v32, %v2298_v36  ;;  %v880_v35 = vand.u32 2147483647, %v2320_v18 }
 0x21b   :  { %v908_v4 = vadd.f32 0.4994258, %v907_v21  ;;  %v932_v44 = vmul.f32 %v931_v48, %v2317_v43  ;;  %v882_v46 = vand.u32 2147483648, %v2320_v18  ;;  %v943_v39 = vmul.f32 %v942_v41, %v2317_v43 }
 0x21c   :  { %v835_v10 = vadd.f32 %v1619_v7, %v834_v13  ;;  %v2339_v9 = vmin.f32 %v968_v55, 16.0  ;;  %v897_v56 = vadd.f32 0.18741608, %v896_v29  ;;  %vm876_vm5 = vweird.f32 %v2320_v18 }
 0x21d   :  { %v793_v38 = vpop.f32.mrf.mxu1  ;;  %v909_v61 = vmul.f32 %v908_v4, %v2298_v36  ;;  %v933_v40 = vadd.f32 0.0036580483, %v932_v44  ;;  %v944_v54 = vadd.f32 0.014752088, %v943_v39  ;;  %v860_v62 = vmul.f32 %v859_v5, %v2269_v51 }
 0x21e   :  { %v839_v20 = vsel %vm838_vm2, %v1619_v7, %v835_v10  ;;  %v1621_v58 = vpop.eup %1620  ;;  %v2343_v8 = vadd.f32 %v2250_v22, %v793_v38  ;;  %v970_v34 = vmul.f32 2.1237322e-06, %v2339_v9  ;;  %v883_v6 = vor.u32 1.1754944e-38, %v882_v46 }
 0x21f   :  { %v844_v16 = vsel %vm841_vm3, %v843_v30, %v839_v20  ;;  %v872_v42 = vmul.f32 %v1621_v58, %v2320_v18  ;;  %vm877_vm4 = vweird.f32 %v1621_v58  ;;  %v2359_v52 = vadd.f32 1.0, %v909_v61 }
 0x220   :  { %v845_v3 = vmul.f32 %v844_v16, %v820_v17  ;;  %v2351_v7 = vmul.f32 0.70710677, %v2343_v8  ;;  %v971_v57 = vadd.f32 0.00028619796, %v970_v34  ;;  %vm878_vm6 = vmor %vm876_vm5, %vm877_vm4  ;;  %v981_v2 = vmul.f32 3.8918573e-05, %v2339_v9 }
 0x221   :  { %v873_v22 = vsub.f32 1.0, %v872_v42  ;;  %1622 = vrcp.f32 %v2359_v52  ;;  %vm881_vm7 = vcmp.eq.f32.partialorder %v880_v35, 8.507059e+37  ;;  %v945_v14 = vmul.f32 %v944_v54, %v2317_v43 }
 0x222   :  { %v1532_v23 = vclamps-f32 %v845_v3, 1.0  ;;  %v1008_v50 = vmul.f32 %v2351_v7, %v2351_v7  ;;  %v898_v18 = vmul.f32 %v897_v56, %v2298_v36  ;;  %v934_v15 = vmul.f32 %v933_v40, %v2317_v43 }
 0x223   :  { %v874_v49 = vmul.f32 %v1621_v58, %v873_v22  ;;  %v972_v37 = vmul.f32 %v971_v57, %v2339_v9  ;;  %v946_v51 = vadd.f32 0.112945676, %v945_v14  ;;  %v982_v27 = vadd.f32 0.001143296, %v981_v2 }
 0x224   :  { %v1048_v11 = vadd.f32 1.0, %v1532_v23  ;;  %v2362_v59 = vmin.f32 %v1008_v50, 16.0  ;;  %v797_v24 = vmul.f32 0.5, %v2265_v33  ;;  %v899_v1 = vadd.f32 1.1283791, %v898_v18 }
 0x225   :  { %v875_v26 = vadd.f32 %v1621_v58, %v874_v49  ;;  %v947_v16 = vmul.f32 %v946_v51, %v2317_v43  ;;  %v983_v28 = vmul.f32 %v982_v27, %v2339_v9  ;;  %v935_v48 = vadd.f32 0.05243302, %v934_v15 }
 0x226   :  { %v1054_v45 = vmul.f32 %v1048_v11, %v796_v63  ;;  %v1010_v0 = vmul.f32 2.1237322e-06, %v2362_v59  ;;  %v1021_v17 = vmul.f32 3.8918573e-05, %v2362_v59  ;;  %v973_v3 = vadd.f32 0.0036580483, %v972_v37 }
 0x227   :  { %v879_v13 = vsel %vm878_vm6, %v1621_v58, %v875_v26  ;;  %v1623_v20 = vpop.eup %1622  ;;  %v948_v23 = vadd.f32 0.4994258, %v947_v16  ;;  %v984_v41 = vadd.f32 0.014752088, %v983_v28  ;;  %v920_v42 = vand.u32 2147483647, %v2359_v52 }
 0x228   :  { %1096 = vmatmul.f32.vlgmr.msra.gmra.mxu2 %v1054_v45  ;;  %v884_v12 = vsel %vm881_vm7, %v883_v6, %v879_v13  ;;  %v1011_v10 = vadd.f32 0.00028619796, %v1010_v0  ;;  %v912_v36 = vmul.f32 %v1623_v20, %v2359_v52  ;;  %v1022_v32 = vadd.f32 0.001143296, %v1021_v17 }
 0x229   :  { %v885_v30 = vmul.f32 %v884_v12, %v860_v62  ;;  %vm917_vm8 = vweird.f32 %v1623_v20  ;;  %v922_v4 = vand.u32 2147483648, %v2359_v52  ;;  %v949_v29 = vmul.f32 %v948_v23, %v2317_v43 }
 0x22a   :  { %v1012_v58 = vmul.f32 %v1011_v10, %v2362_v59  ;;  %v913_v21 = vsub.f32 1.0, %v912_v36  ;;  %v1023_v63 = vmul.f32 %v1022_v32, %v2362_v59  ;;  %v985_v44 = vmul.f32 %v984_v41, %v2339_v9 }
 0x22b   :  { %v1533_v55 = vclamps-f32 %v885_v30, 1.0  ;;  %vm916_vm9 = vweird.f32 %v2359_v52  ;;  %v950_v61 = vadd.f32 1.0, %v949_v29  ;;  %v900_v46 = vmul.f32 %v899_v1, %v2288_v25 }
 0x22c   :  { %v914_v5 = vmul.f32 %v1623_v20, %v913_v21  ;;  %v1024_v11 = vadd.f32 0.014752088, %v1023_v63  ;;  %v1013_v34 = vadd.f32 0.0036580483, %v1012_v58  ;;  %v986_v45 = vadd.f32 0.112945676, %v985_v44  ;;  %vm918_vm10 = vmor %vm916_vm9, %vm917_vm8 }
 0x22d   :  { %v1049_v38 = vadd.f32 1.0, %v1533_v55  ;;  %v936_v39 = vmul.f32 %v935_v48, %v2317_v43  ;;  %v923_v50 = vor.u32 1.1754944e-38, %v922_v4  ;;  %v974_v49 = vmul.f32 %v973_v3, %v2339_v9 }
 0x22e   :  { %v915_v22 = vadd.f32 %v1623_v20, %v914_v5  ;;  %v1025_v35 = vmul.f32 %v1024_v11, %v2362_v59  ;;  %vm921_vm11 = vcmp.eq.f32.partialorder %v920_v42, 8.507059e+37  ;;  %1624 = vrcp.f32 %v950_v61 }
 0x22f   :  { %v1055_v33 = vmul.f32 %v1049_v38, %v797_v24  ;;  %v1014_v40 = vmul.f32 %v1013_v34, %v2362_v59  ;;  %v987_v54 = vmul.f32 %v986_v45, %v2339_v9  ;;  %v937_v62 = vadd.f32 0.18741608, %v936_v39 }
 0x230   :  { %v919_v56 = vsel %vm918_vm10, %v1623_v20, %v915_v22  ;;  %v1026_v26 = vadd.f32 0.112945676, %v1025_v35  ;;  %v975_v25 = vadd.f32 0.05243302, %v974_v49  ;;  %v798_v15 = vmul.f32 0.5, %v2284_v19 }
 0x231   :  { %1099 = vmatmul.f32.gmra.mxu2 %v1055_v33  ;;  %v924_v52 = vsel %vm921_vm11, %v923_v50, %v919_v56  ;;  %v988_v6 = vadd.f32 0.4994258, %v987_v54  ;;  %v1015_v13 = vadd.f32 0.05243302, %v1014_v40  ;;  %v938_v10 = vmul.f32 %v937_v62, %v2317_v43 }
 0x232   :  { %v925_v57 = vmul.f32 %v924_v52, %v900_v46  ;;  %v1027_v0 = vmul.f32 %v1026_v26, %v2362_v59  ;;  %v976_v27 = vmul.f32 %v975_v25, %v2339_v9  ;;  %v962_v16 = vand.u32 2147483648, %v950_v61 }
 0x233   :  { %v989_v14 = vmul.f32 %v988_v6, %v2339_v9  ;;  %v1016_v24 = vmul.f32 %v1015_v13, %v2362_v59  ;;  %v939_v36 = vadd.f32 1.1283791, %v938_v10  ;;  %v960_v28 = vand.u32 2147483647, %v950_v61 }
 0x234   :  { %v1534_v2 = vclamps-f32 %v925_v57, 1.0  ;;  %v1625_v18 = vpop.eup %1624  ;;  %v1028_v37 = vadd.f32 0.4994258, %v1027_v0  ;;  %v977_v32 = vadd.f32 0.18741608, %v976_v27  ;;  %vm956_vm13 = vweird.f32 %v950_v61 }
 0x235   :  { %v952_v30 = vmul.f32 %v1625_v18, %v950_v61  ;;  %v990_v51 = vadd.f32 1.0, %v989_v14  ;;  %vm957_vm12 = vweird.f32 %v1625_v18  ;;  %v1017_v43 = vadd.f32 0.18741608, %v1016_v24 }
 0x236   :  { %v1050_v12 = vadd.f32 1.0, %v1534_v2  ;;  %v1029_v20 = vmul.f32 %v1028_v37, %v2362_v59  ;;  %vm958_vm14 = vmor %vm956_vm13, %vm957_vm12  ;;  %v963_v3 = vor.u32 1.1754944e-38, %v962_v16  ;;  %v940_v38 = vmul.f32 %v939_v36, %v2307_v53  ;;  %v1407_v16 = vld [vmem:[#allocation8 + $0xe0] sm:$0xff] }
 0x237   :  { %v953_v55 = vsub.f32 1.0, %v952_v30  ;;  %1626 = vrcp.f32 %v990_v51  ;;  %vm961_vm15 = vcmp.eq.f32.partialorder %v960_v28, 8.507059e+37  ;;  %v978_v23 = vmul.f32 %v977_v32, %v2339_v9  ;;  %v1405_v32 = vld [vmem:[#allocation8 + $0xd0] sm:$0xff] }
 0x238   :  { %v1056_v17 = vmul.f32 %v1050_v12, %v798_v15  ;;  %v1030_v1 = vadd.f32 1.0, %v1029_v20  ;;  %v1018_v33 = vmul.f32 %v1017_v43, %v2362_v59  ;;  %v1002_v29 = vand.u32 2147483648, %v990_v51  ;;  %v1410_v20 = vld [vmem:[#allocation8 + $0xf8] sm:$0xff] }
 0x239   :  { %v954_v19 = vmul.f32 %v1625_v18, %v953_v55  ;;  %v979_v34 = vadd.f32 1.1283791, %v978_v23  ;;  %v1000_v61 = vand.u32 2147483647, %v990_v51  ;;  %v799_v53 = vmul.f32 0.5, %v2302_v60  ;;  %1452 = vmatpush.msrb.mxu0 %v1410_v20  ;;  %1560 = vmatpush.msrb.mxu2 %v1410_v20  ;;  %v1406_v43 = vld [vmem:[#allocation8 + $0xd8] sm:$0xff] }
 0x23a   :  { %1102 = vmatmul.f32.gmra.mxu2 %v1056_v17  ;;  %1628 = vrcp.f32 %v1030_v1  ;;  %v1019_v45 = vadd.f32 1.1283791, %v1018_v33  ;;  %vm996_vm1 = vweird.f32 %v990_v51  ;;  %v1003_v39 = vor.u32 1.1754944e-38, %v1002_v29  ;;  %v1409_v17 = vld [vmem:[#allocation8 + $0xf0] sm:$0xff]  ;;  %v1402_v33 = vld [vmem:[#allocation8 + $0xb8] sm:$0xff]  ;;  %v1399_v29 = vld [vmem:[#allocation8 + $0xa0] sm:$0xff] }
 0x23b   :  { %v955_v48 = vadd.f32 %v1625_v18, %v954_v19  ;;  %v1042_v50 = vand.u32 2147483648, %v1030_v1  ;;  %v1040_v56 = vand.u32 2147483647, %v1030_v1  ;;  %v980_v40 = vmul.f32 %v979_v34, %v2331_v31  ;;  %1417 = vmatpush.msra.mxu3 %v1409_v17  ;;  %v1385_v20 = vld [vmem:[#allocation8 + $0x30] sm:$0xff] }
 0x23c   :  { %vm1001_vm4 = vcmp.eq.f32.partialorder %v1000_v61, 8.507059e+37  ;;  %vm1036_vm5 = vweird.f32 %v1030_v1  ;;  %v1020_v62 = vmul.f32 %v1019_v45, %v2351_v7  ;;  %v800_v13 = vmul.f32 0.5, %v2323_v47  ;;  %v2409_v7 = vld [vmem:[%s2582_s9] ss:$0 sm:$0xff]  ;;  %v1398_v61 = vld [vmem:[#allocation8 + $0x98] sm:$0xff] }
 0x23d   :  { %v1627_v58 = vpop.eup %1626  ;;  %v959_v21 = vsel %vm958_vm14, %v1625_v18, %v955_v48  ;;  %v1043_v26 = vor.u32 1.1754944e-38, %v1042_v50  ;;  %vm1041_vm7 = vcmp.eq.f32.partialorder %v1040_v56, 8.507059e+37  ;;  %v801_v12 = vmul.f32 0.5, %v2343_v8  ;;  %1418 = vmatpush.msra.mxu3 %v1407_v16  ;;  %v1393_v56 = vld [vmem:[#allocation8 + $0x70] sm:$0xff] }
 0x23e   :  { %v964_v41 = vsel %vm961_vm15, %v963_v3, %v959_v21  ;;  %v992_v63 = vmul.f32 %v1627_v58, %v990_v51  ;;  %vm997_vm0 = vweird.f32 %v1627_v58  ;;  %v1404_v21 = vld [vmem:[#allocation8 + $0xc8] sm:$0xff] }
 0x23f   :  { %v965_v42 = vmul.f32 %v964_v41, %v940_v38  ;;  %vm998_vm2 = vmor %vm996_vm1, %vm997_vm0  ;;  %1419 = vmatpush.msra.mxu3 %v1405_v32  ;;  %v1403_v38 = vld [vmem:[#allocation8 + $0xc0] sm:$0xff] }
 0x240   :  { %v1629_v4 = vpop.eup %1628  ;;  %v993_v5 = vsub.f32 1.0, %v992_v63  ;;  %v1401_v63 = vld [vmem:[#allocation8 + $0xb0] sm:$0xff] }
 0x241   :  { %v1535_v44 = vclamps-f32 %v965_v42, 1.0  ;;  %v1032_v11 = vmul.f32 %v1629_v4, %v1030_v1  ;;  %vm1037_vm3 = vweird.f32 %v1629_v4  ;;  %v1408_v1 = vld [vmem:[#allocation8 + $0xe8] sm:$0xff]  ;;  %1420 = vmatpush.msra.mxu3 %v1403_v38 }
 0x242   :  { %v994_v22 = vmul.f32 %v1627_v58, %v993_v5  ;;  %vm1038_vm6 = vmor %vm1036_vm5, %vm1037_vm3  ;;  %1453 = vmatpush.msrb.mxu0 %v1408_v1  ;;  %1561 = vmatpush.msrb.mxu2 %v1408_v1 }
 0x243   :  { %v1051_v35 = vadd.f32 1.0, %v1535_v44  ;;  %v1033_v46 = vsub.f32 1.0, %v1032_v11  ;;  %1421 = vmatpush.msra.mxu3 %v1401_v63  ;;  %v1400_v44 = vld [vmem:[#allocation8 + $0xa8] sm:$0xff] }
 0x244   :  { %v995_v9 = vadd.f32 %v1627_v58, %v994_v22  ;;  %1454 = vmatpush.msrb.mxu0 %v1406_v43  ;;  %1562 = vmatpush.msrb.mxu2 %v1406_v43  ;;  %v1397_v22 = vld [vmem:[#allocation8 + $0x90] sm:$0xff] }
 0x245   :  { %v1057_v59 = vmul.f32 %v1051_v35, %v799_v53  ;;  %v1034_v49 = vmul.f32 %v1629_v4, %v1033_v46  ;;  %1422 = vmatpush.msra.mxu3 %v1399_v29  ;;  %v1380_v29 = vld [vmem:[#allocation8 + $0x8] sm:$0xff] }
 0x246   :  { %v999_v52 = vsel %vm998_vm2, %v1627_v58, %v995_v9  ;;  %1455 = vmatpush.msrb.mxu0 %v1404_v21  ;;  %1563 = vmatpush.msrb.mxu2 %v1404_v21  ;;  %v1395_v9 = vld [vmem:[#allocation8 + $0x80] sm:$0xff]  ;;  %v1381_v21 = vld [vmem:[#allocation8 + $0x10] sm:$0xff] }
 0x247   :  { %1105 = vmatmul.f32.gmra.mxu2 %v1057_v59  ;;  %v1004_v54 = vsel %vm1001_vm4, %v1003_v39, %v999_v52  ;;  %v1035_v57 = vadd.f32 %v1629_v4, %v1034_v49  ;;  %1423 = vmatpush.msra.mxu3 %v1397_v22  ;;  %v1396_v39 = vld [vmem:[#allocation8 + $0x88] sm:$0xff] }
 0x248   :  { %v1005_v60 = vmul.f32 %v1004_v54, %v980_v40  ;;  %1456 = vmatpush.msrb.mxu0 %v1402_v33  ;;  %1564 = vmatpush.msrb.mxu2 %v1402_v33  ;;  %v1394_v40 = vld [vmem:[#allocation8 + $0x78] sm:$0xff] }
 0x249   :  { %v1039_v6 = vsel %vm1038_vm6, %v1629_v4, %v1035_v57  ;;  %1424 = vmatpush.msra.mxu3 %v1395_v9 }
 0x24a   :  { %v1536_v25 = vclamps-f32 %v1005_v60, 1.0  ;;  %v1044_v2 = vsel %vm1041_vm7, %v1043_v26, %v1039_v6  ;;  %1457 = vmatpush.msrb.mxu0 %v1400_v44  ;;  %1565 = vmatpush.msrb.mxu2 %v1400_v44  ;;  %v1391_v6 = vld [vmem:[#allocation8 + $0x60] sm:$0xff] }
 0x24b   :  { %v1045_v0 = vmul.f32 %v1044_v2, %v1020_v62  ;;  %1425 = vmatpush.msra.mxu3 %v1393_v56 }
 0x24c   :  { %v1052_v14 = vadd.f32 1.0, %v1536_v25  ;;  %1458 = vmatpush.msrb.mxu0 %v1398_v61  ;;  %1566 = vmatpush.msrb.mxu2 %v1398_v61  ;;  %v1392_v25 = vld [vmem:[#allocation8 + $0x68] sm:$0xff] }
 0x24d   :  { %v1537_v31 = vclamps-f32 %v1045_v0, 1.0  ;;  %1426 = vmatpush.msra.mxu3 %v1391_v6 }
 0x24e   :  { %v1058_v18 = vmul.f32 %v1052_v14, %v800_v13  ;;  %1459 = vmatpush.msrb.mxu0 %v1396_v39  ;;  %1567 = vmatpush.msrb.mxu2 %v1396_v39 }
 0x24f   :  { %v1053_v15 = vadd.f32 1.0, %v1537_v31  ;;  %v1389_v31 = vld [vmem:[#allocation8 + $0x50] sm:$0xff] }
 0x250   :  { %1108 = vmatmul.f32.gmra.mxu2 %v1058_v18  ;;  %1460 = vmatpush.msrb.mxu0 %v1394_v40  ;;  %v1390_v18 = vld [vmem:[#allocation8 + $0x58] sm:$0xff] }
 0x251   :  { %v1059_v37 = vmul.f32 %v1053_v15, %v801_v12  ;;  %1568 = vmatpush.msrb.mxu2 %v1394_v40  ;;  %1427 = vmatpush.msra.mxu3 %v1389_v31 }
 0x252   :  { %1461 = vmatpush.msrb.mxu0 %v1392_v25 }
 0x253   :  { %1569 = vmatpush.msrb.mxu2 %v1392_v25 }
 0x254   :  { %1462 = vmatpush.msrb.mxu0 %v1390_v18 }
 0x255   :  { %1570 = vmatpush.msrb.mxu2 %v1390_v18 }
 0x258   :  { %1111 = vmatmul.f32.gmra.mxu2 %v1059_v37  ;;  %v1387_v37 = vld [vmem:[#allocation8 + $0x40] sm:$0xff] }
 0x259   :  { %1428 = vmatpush.msra.mxu3 %v1387_v37 }
 0x25b   :  { %1429 = vmatpush.msra.mxu3 %v1385_v20 }
 0x2ab   :  { %v1097_v10 = vpop.f32.mrf.mxu2 }
 0x2ac   :  { %v2412_v30 = vadd.f32 %v2409_v7, %v1097_v10  ;;  %v1388_v10 = vld [vmem:[#allocation8 + $0x48] sm:$0xff] }
 0x2ad   :  { %1463 = vmatpush.msrb.mxu0 %v1388_v10  ;;  %1571 = vmatpush.msrb.mxu2 %v1388_v10 }
 0x2ae   :  { %v2415_v47 = vmul.f32 0.70710677, %v2412_v30 }
 0x2b0   :  { %v1127_v51 = vmul.f32 %v2415_v47, %v2415_v47 }
 0x2b2   :  { %v2419_v27 = vmin.f32 %v1127_v51, 16.0 }
 0x2b4   :  { %v1129_v8 = vmul.f32 2.1237322e-06, %v2419_v27  ;;  %v1140_v24 = vmul.f32 3.8918573e-05, %v2419_v27  ;;  %v1100_v28 = vpop.f32.mrf.mxu2 }
 0x2b5   :  { %v2426_v3 = vadd.f32 %v2409_v7, %v1100_v28  ;;  %v1384_v28 = vld [vmem:[#allocation8 + $0x28] sm:$0xff] }
 0x2b6   :  { %v1130_v55 = vadd.f32 0.00028619796, %v1129_v8  ;;  %v1141_v36 = vadd.f32 0.001143296, %v1140_v24  ;;  %v1386_v24 = vld [vmem:[#allocation8 + $0x38] sm:$0xff] }
 0x2b7   :  { %v2429_v41 = vmul.f32 0.70710677, %v2426_v3  ;;  %1464 = vmatpush.msrb.mxu0 %v1386_v24  ;;  %1572 = vmatpush.msrb.mxu2 %v1386_v24 }
 0x2b8   :  { %v1131_v19 = vmul.f32 %v1130_v55, %v2419_v27  ;;  %v1142_v48 = vmul.f32 %v1141_v36, %v2419_v27 }
 0x2b9   :  { %v1167_v5 = vmul.f32 %v2429_v41, %v2429_v41  ;;  %1465 = vmatpush.msrb.mxu0 %v1384_v28  ;;  %1573 = vmatpush.msrb.mxu2 %v1384_v28 }
 0x2ba   :  { %v1132_v58 = vadd.f32 0.0036580483, %v1131_v19  ;;  %v1143_v23 = vadd.f32 0.014752088, %v1142_v48  ;;  %v1383_v19 = vld [vmem:[#allocation8 + $0x20] sm:$0xff] }
 0x2bb   :  { %v2435_v34 = vmin.f32 %v1167_v5, 16.0  ;;  %1430 = vmatpush.msra.mxu3 %v1383_v19  ;;  %v1379_v5 = vld [vmem:[#allocation8] sm:$0xff] }
 0x2bc   :  { %v1144_v42 = vmul.f32 %v1143_v23, %v2419_v27  ;;  %v1133_v4 = vmul.f32 %v1132_v58, %v2419_v27 }
 0x2bd   :  { %v1169_v35 = vmul.f32 2.1237322e-06, %v2435_v34  ;;  %v1180_v46 = vmul.f32 3.8918573e-05, %v2435_v34  ;;  %v1103_v60 = vpop.f32.mrf.mxu2  ;;  %1431 = vmatpush.msra.mxu3 %v1381_v21 }
 0x2be   :  { %v1145_v11 = vadd.f32 0.112945676, %v1144_v42  ;;  %v1134_v45 = vadd.f32 0.05243302, %v1133_v4  ;;  %v2445_v62 = vadd.f32 %v2409_v7, %v1103_v60 }
 0x2bf   :  { %v1170_v59 = vadd.f32 0.00028619796, %v1169_v35  ;;  %v1181_v49 = vadd.f32 0.001143296, %v1180_v46  ;;  %1432 = vmatpush.msra.mxu3 %v1379_v5 }
 0x2c0   :  { %v1146_v53 = vmul.f32 %v1145_v11, %v2419_v27  ;;  %v1135_v54 = vmul.f32 %v1134_v45, %v2419_v27  ;;  %v2450_v14 = vmul.f32 0.70710677, %v2445_v62 }
 0x2c1   :  { %v1171_v57 = vmul.f32 %v1170_v59, %v2435_v34  ;;  %v1182_v26 = vmul.f32 %v1181_v49, %v2435_v34 }
 0x2c2   :  { %v1147_v50 = vadd.f32 0.4994258, %v1146_v53  ;;  %v1136_v15 = vadd.f32 0.18741608, %v1135_v54  ;;  %v1207_v12 = vmul.f32 %v2450_v14, %v2450_v14 }
 0x2c3   :  { %v1172_v0 = vadd.f32 0.0036580483, %v1171_v57  ;;  %v1183_v13 = vadd.f32 0.014752088, %v1182_v26 }
 0x2c4   :  { %v1148_v52 = vmul.f32 %v1147_v50, %v2419_v27  ;;  %v2457_v17 = vmin.f32 %v1207_v12, 16.0  ;;  %v1137_v16 = vmul.f32 %v1136_v15, %v2419_v27  ;;  %v1382_v27 = vld [vmem:[#allocation8 + $0x18] sm:$0xff]  ;;  %v1115_v12 = vmul.f32 0.5, %v2412_v30 }
 0x2c5   :  { %v1184_v51 = vmul.f32 %v1183_v13, %v2435_v34  ;;  %v1173_v8 = vmul.f32 %v1172_v0, %v2435_v34  ;;  %1466 = vmatpush.msrb.mxu0 %v1382_v27  ;;  %1574 = vmatpush.msrb.mxu2 %v1382_v27 }
 0x2c6   :  { %v2447_v2 = vadd.f32 1.0, %v1148_v52  ;;  %v1209_v36 = vmul.f32 2.1237322e-06, %v2457_v17  ;;  %v1220_v43 = vmul.f32 3.8918573e-05, %v2457_v17 }
 0x2c7   :  { %v1185_v55 = vadd.f32 0.112945676, %v1184_v51  ;;  %v1174_v48 = vadd.f32 0.05243302, %v1173_v8  ;;  %v1138_v63 = vadd.f32 1.1283791, %v1137_v16  ;;  %1467 = vmatpush.msrb.mxu0 %v1380_v29  ;;  %1575 = vmatpush.msrb.mxu2 %v1380_v29 }
 0x2c8   :  { %1630 = vrcp.f32 %v2447_v2  ;;  %v1210_v38 = vadd.f32 0.00028619796, %v1209_v36  ;;  %v1221_v42 = vadd.f32 0.001143296, %v1220_v43  ;;  %v1159_v44 = vand.u32 2147483647, %v2447_v2 }
 0x2c9   :  { %v1186_v32 = vmul.f32 %v1185_v55, %v2435_v34  ;;  %v1161_v11 = vand.u32 2147483648, %v2447_v2  ;;  %v1175_v61 = vmul.f32 %v1174_v48, %v2435_v34  ;;  %vm1155_vm9 = vweird.f32 %v2447_v2 }
 0x2ca   :  { %v1211_v4 = vmul.f32 %v1210_v38, %v2457_v17  ;;  %v1222_v45 = vmul.f32 %v1221_v42, %v2457_v17  ;;  %v1106_v46 = vpop.f32.mrf.mxu2  ;;  %v1139_v49 = vmul.f32 %v1138_v63, %v2415_v47  ;;  %vm1160_vm11 = vcmp.eq.f32.partialorder %v1159_v44, 8.507059e+37 }
 0x2cb   :  { %v1187_v23 = vadd.f32 0.4994258, %v1186_v32  ;;  %v2473_v39 = vadd.f32 %v2409_v7, %v1106_v46  ;;  %v1162_v56 = vor.u32 1.1754944e-38, %v1161_v11  ;;  %v1176_v40 = vadd.f32 0.18741608, %v1175_v61 }
 0x2cc   :  { %v1212_v35 = vadd.f32 0.0036580483, %v1211_v4  ;;  %v1223_v59 = vadd.f32 0.014752088, %v1222_v45 }
 0x2cd   :  { %v1188_v22 = vmul.f32 %v1187_v23, %v2435_v34  ;;  %v2479_v52 = vmul.f32 0.70710677, %v2473_v39 }
 0x2ce   :  { %v1631_v1 = vpop.eup %1630  ;;  %v1213_v57 = vmul.f32 %v1212_v35, %v2457_v17  ;;  %v1224_v26 = vmul.f32 %v1223_v59, %v2457_v17 }
 0x2cf   :  { %v1151_v58 = vmul.f32 %v1631_v1, %v2447_v2  ;;  %vm1156_vm8 = vweird.f32 %v1631_v1  ;;  %v2470_v9 = vadd.f32 1.0, %v1188_v22  ;;  %v1247_v6 = vmul.f32 %v2479_v52, %v2479_v52 }
 0x2d0   :  { %vm1157_vm10 = vmor %vm1155_vm9, %vm1156_vm8  ;;  %v1225_v47 = vadd.f32 0.112945676, %v1224_v26  ;;  %v1177_v2 = vmul.f32 %v1176_v40, %v2435_v34  ;;  %v1214_v18 = vadd.f32 0.05243302, %v1213_v57 }
 0x2d1   :  { %v1152_v33 = vsub.f32 1.0, %v1151_v58  ;;  %1632 = vrcp.f32 %v2470_v9  ;;  %v2486_v0 = vmin.f32 %v1247_v6, 16.0  ;;  %v1201_v28 = vand.u32 2147483648, %v2470_v9 }
 0x2d2   :  { %v1226_v15 = vmul.f32 %v1225_v47, %v2457_v17  ;;  %v1178_v55 = vadd.f32 1.1283791, %v1177_v2  ;;  %v1215_v19 = vmul.f32 %v1214_v18, %v2457_v17  ;;  %v1199_v48 = vand.u32 2147483647, %v2470_v9 }
 0x2d3   :  { %v1153_v53 = vmul.f32 %v1631_v1, %v1152_v33  ;;  %v1249_v37 = vmul.f32 2.1237322e-06, %v2486_v0  ;;  %v1109_v10 = vpop.f32.mrf.mxu2  ;;  %v1260_v34 = vmul.f32 3.8918573e-05, %v2486_v0  ;;  %vm1195_vm13 = vweird.f32 %v2470_v9 }
 0x2d4   :  { %v2493_v20 = vadd.f32 %v2409_v7, %v1109_v10  ;;  %v1227_v24 = vadd.f32 0.4994258, %v1226_v15  ;;  %v1216_v33 = vadd.f32 0.18741608, %v1215_v19  ;;  %v1202_v4 = vor.u32 1.1754944e-38, %v1201_v28 }
 0x2d5   :  { %v1154_v50 = vadd.f32 %v1631_v1, %v1153_v53  ;;  %v1250_v16 = vadd.f32 0.00028619796, %v1249_v37  ;;  %v1261_v58 = vadd.f32 0.001143296, %v1260_v34  ;;  %v1179_v5 = vmul.f32 %v1178_v55, %v2429_v41 }
 0x2d6   :  { %v2498_v30 = vmul.f32 0.70710677, %v2493_v20  ;;  %v1228_v32 = vmul.f32 %v1227_v24, %v2457_v17  ;;  %vm1200_vm15 = vcmp.eq.f32.partialorder %v1199_v48, 8.507059e+37 }
 0x2d7   :  { %v1158_v54 = vsel %vm1157_vm10, %v1631_v1, %v1154_v50  ;;  %v1633_v31 = vpop.eup %1632  ;;  %v1251_v27 = vmul.f32 %v1250_v16, %v2486_v0  ;;  %v1262_v63 = vmul.f32 %v1261_v58, %v2486_v0 }
 0x2d8   :  { %v1163_v60 = vsel %vm1160_vm11, %v1162_v56, %v1158_v54  ;;  %v1191_v8 = vmul.f32 %v1633_v31, %v2470_v9  ;;  %vm1196_vm12 = vweird.f32 %v1633_v31  ;;  %v1287_v38 = vmul.f32 %v2498_v30, %v2498_v30 }
 0x2d9   :  { %v1164_v25 = vmul.f32 %v1163_v60, %v1139_v49  ;;  %v2505_v21 = vadd.f32 1.0, %v1228_v32  ;;  %vm1197_vm14 = vmor %vm1195_vm13, %vm1196_vm12  ;;  %v1263_v11 = vadd.f32 0.014752088, %v1262_v63  ;;  %v1252_v45 = vadd.f32 0.0036580483, %v1251_v27 }
 0x2da   :  { %v1192_v36 = vsub.f32 1.0, %v1191_v8  ;;  %v2510_v42 = vmin.f32 %v1287_v38, 16.0  ;;  %v1217_v9 = vmul.f32 %v1216_v33, %v2457_v17  ;;  %v1116_v54 = vmul.f32 0.5, %v2426_v3 }
 0x2db   :  { %v1538_v13 = vclamps-f32 %v1164_v25, 1.0  ;;  %1634 = vrcp.f32 %v2505_v21  ;;  %v1112_v29 = vpop.f32.mrf.mxu2  ;;  %v1264_v46 = vmul.f32 %v1263_v11, %v2486_v0  ;;  %v1253_v57 = vmul.f32 %v1252_v45, %v2486_v0 }
 0x2dc   :  { %v1193_v43 = vmul.f32 %v1633_v31, %v1192_v36  ;;  %v1289_v22 = vmul.f32 2.1237322e-06, %v2510_v42  ;;  %v2516_v61 = vadd.f32 %v2409_v7, %v1112_v29  ;;  %v1300_v56 = vmul.f32 3.8918573e-05, %v2510_v42 }
 0x2dd   :  { %v1367_v51 = vadd.f32 1.0, %v1538_v13  ;;  %v1265_v49 = vadd.f32 0.112945676, %v1264_v46  ;;  %v1218_v17 = vadd.f32 1.1283791, %v1217_v9  ;;  %v1241_v3 = vand.u32 2147483648, %v2505_v21 }
 0x2de   :  { %v1194_v23 = vadd.f32 %v1633_v31, %v1193_v43  ;;  %v1290_v50 = vadd.f32 0.00028619796, %v1289_v22  ;;  %v2521_v59 = vmul.f32 0.70710677, %v2516_v61  ;;  %v1301_v47 = vadd.f32 0.001143296, %v1300_v56 }
 0x2df   :  { %v1373_v1 = vmul.f32 %v1367_v51, %v1115_v12  ;;  %v1266_v25 = vmul.f32 %v1265_v49, %v2486_v0  ;;  %v1239_v18 = vand.u32 2147483647, %v2505_v21  ;;  %v1254_v10 = vadd.f32 0.05243302, %v1253_v57 }
 0x2e0   :  { %v1198_v44 = vsel %vm1197_vm14, %v1633_v31, %v1194_v23  ;;  %v1327_v7 = vmul.f32 %v2521_v59, %v2521_v59  ;;  %v1291_v2 = vmul.f32 %v1290_v50, %v2510_v42  ;;  %v1302_v37 = vmul.f32 %v1301_v47, %v2510_v42 }
 0x2e1   :  { %1433 = vmatmul.f32.vlgmr.msra.gmra.mxu3 %v1373_v1  ;;  %1468 = vmatmul.f32.vlgmr.msrb.gmra.mxu0 %v1373_v1  ;;  %v1203_v53 = vsel %vm1200_vm15, %v1202_v4, %v1198_v44  ;;  %v1635_v40 = vpop.eup %1634  ;;  %v1267_v12 = vadd.f32 0.4994258, %v1266_v25  ;;  %v1219_v24 = vmul.f32 %v1218_v17, %v2450_v14  ;;  %vm1235_vm1 = vweird.f32 %v2505_v21 }
 0x2e2   :  { %v1204_v35 = vmul.f32 %v1203_v53, %v1179_v5  ;;  %v1231_v26 = vmul.f32 %v1635_v40, %v2505_v21  ;;  %v2529_v6 = vmin.f32 %v1327_v7, 16.0  ;;  %vm1236_vm0 = vweird.f32 %v1635_v40 }
 0x2e3   :  { %v1268_v55 = vmul.f32 %v1267_v12, %v2486_v0  ;;  %v1303_v16 = vadd.f32 0.014752088, %v1302_v37  ;;  %v1292_v1 = vadd.f32 0.0036580483, %v1291_v2  ;;  %vm1237_vm2 = vmor %vm1235_vm1, %vm1236_vm0  ;;  %v1242_v32 = vor.u32 1.1754944e-38, %v1241_v3 }
 0x2e4   :  { %v1539_v41 = vclamps-f32 %v1204_v35, 1.0  ;;  %v1232_v31 = vsub.f32 1.0, %v1231_v26  ;;  %v1329_v15 = vmul.f32 2.1237322e-06, %v2529_v6  ;;  %v1340_v8 = vmul.f32 3.8918573e-05, %v2529_v6 }
 0x2e5   :  { %v1269_v43 = vadd.f32 1.0, %v1268_v55  ;;  %v1304_v48 = vmul.f32 %v1303_v16, %v2510_v42  ;;  %v1255_v58 = vmul.f32 %v1254_v10, %v2486_v0  ;;  %vm1240_vm3 = vcmp.eq.f32.partialorder %v1239_v18, 8.507059e+37 }
 0x2e6   :  { %v1368_v60 = vadd.f32 1.0, %v1539_v41  ;;  %v1233_v51 = vmul.f32 %v1635_v40, %v1232_v31  ;;  %v1330_v34 = vadd.f32 0.00028619796, %v1329_v15  ;;  %v1341_v19 = vadd.f32 0.001143296, %v1340_v8 }
 0x2e7   :  { %1636 = vrcp.f32 %v1269_v43  ;;  %v1293_v23 = vmul.f32 %v1292_v1, %v2510_v42  ;;  %v1305_v33 = vadd.f32 0.112945676, %v1304_v48  ;;  %v1256_v5 = vadd.f32 0.18741608, %v1255_v58 }
 0x2e8   :  { %v1374_v13 = vmul.f32 %v1368_v60, %v1116_v54  ;;  %v1234_v36 = vadd.f32 %v1635_v40, %v1233_v51  ;;  %v1331_v28 = vmul.f32 %v1330_v34, %v2529_v6  ;;  %v1342_v14 = vmul.f32 %v1341_v19, %v2529_v6 }
 0x2e9   :  { %v1306_v44 = vmul.f32 %v1305_v33, %v2510_v42  ;;  %v1117_v22 = vmul.f32 0.5, %v2445_v62  ;;  %v1294_v53 = vadd.f32 0.05243302, %v1293_v23  ;;  %v1257_v41 = vmul.f32 %v1256_v5, %v2486_v0 }
 0x2ea   :  { %1436 = vmatmul.f32.gmra.mxu3 %v1374_v13  ;;  %1471 = vmatmul.f32.gmra.mxu0 %v1374_v13  ;;  %v1238_v38 = vsel %vm1237_vm2, %v1635_v40, %v1234_v36  ;;  %v1332_v21 = vadd.f32 0.0036580483, %v1331_v28  ;;  %v1343_v4 = vadd.f32 0.014752088, %v1342_v14  ;;  %v1281_v60 = vand.u32 2147483648, %v1269_v43 }
 0x2eb   :  { %v1243_v27 = vsel %vm1240_vm3, %v1242_v32, %v1238_v38  ;;  %v1307_v9 = vadd.f32 0.4994258, %v1306_v44  ;;  %v1295_v54 = vmul.f32 %v1294_v53, %v2510_v42  ;;  %v1258_v25 = vadd.f32 1.1283791, %v1257_v41 }
 0x2ec   :  { %v1244_v63 = vmul.f32 %v1243_v27, %v1219_v24  ;;  %v1344_v11 = vmul.f32 %v1343_v4, %v2529_v6  ;;  %v1333_v46 = vmul.f32 %v1332_v21, %v2529_v6  ;;  %v1279_v2 = vand.u32 2147483647, %v1269_v43 }
 0x2ed   :  { %v1637_v35 = vpop.eup %1636  ;;  %v1308_v40 = vmul.f32 %v1307_v9, %v2510_v42  ;;  %vm1275_vm5 = vweird.f32 %v1269_v43  ;;  %v1296_v31 = vadd.f32 0.18741608, %v1295_v54  ;;  %v1282_v15 = vor.u32 1.1754944e-38, %v1281_v60 }
 0x2ee   :  { %v1540_v29 = vclamps-f32 %v1244_v63, 1.0  ;;  %v1345_v50 = vadd.f32 0.112945676, %v1344_v11  ;;  %v1271_v56 = vmul.f32 %v1637_v35, %v1269_v43  ;;  %v1334_v57 = vadd.f32 0.05243302, %v1333_v46 }
 0x2ef   :  { %v1309_v26 = vadd.f32 1.0, %v1308_v40  ;;  %vm1276_vm4 = vweird.f32 %v1637_v35  ;;  %v1259_v3 = vmul.f32 %v1258_v25, %v2479_v52  ;;  %vm1280_vm7 = vcmp.eq.f32.partialorder %v1279_v2, 8.507059e+37 }
 0x2f0   :  { %v1369_v45 = vadd.f32 1.0, %v1540_v29  ;;  %v1346_v7 = vmul.f32 %v1345_v50, %v2529_v6  ;;  %v1272_v62 = vsub.f32 1.0, %v1271_v56  ;;  %v1335_v18 = vmul.f32 %v1334_v57, %v2529_v6  ;;  %vm1277_vm6 = vmor %vm1275_vm5, %vm1276_vm4 }
 0x2f1   :  { %1638 = vrcp.f32 %v1309_v26  ;;  %v1297_v24 = vmul.f32 %v1296_v31, %v2510_v42  ;;  %v1118_v1 = vmul.f32 0.5, %v2473_v39  ;;  %v1321_v52 = vand.u32 2147483648, %v1309_v26 }
 0x2f2   :  { %v1375_v49 = vmul.f32 %v1369_v45, %v1117_v22  ;;  %v1347_v17 = vadd.f32 0.4994258, %v1346_v7  ;;  %v1273_v47 = vmul.f32 %v1637_v35, %v1272_v62  ;;  %v1336_v34 = vadd.f32 0.18741608, %v1335_v18 }
 0x2f3   :  { %v1298_v28 = vadd.f32 1.1283791, %v1297_v24  ;;  %v1319_v38 = vand.u32 2147483647, %v1309_v26  ;;  %vm1315_vm9 = vweird.f32 %v1309_v26  ;;  %v1322_v39 = vor.u32 1.1754944e-38, %v1321_v52 }
 0x2f4   :  { %1439 = vmatmul.f32.gmra.mxu3 %v1375_v49  ;;  %1474 = vmatmul.f32.gmra.mxu0 %v1375_v49  ;;  %v1274_v0 = vadd.f32 %v1637_v35, %v1273_v47  ;;  %v1348_v13 = vmul.f32 %v1347_v17, %v2529_v6  ;;  %v1337_v32 = vmul.f32 %v1336_v34, %v2529_v6  ;;  %v1119_v45 = vmul.f32 0.5, %v2493_v20 }
 0x2f5   :  { %v1299_v27 = vmul.f32 %v1298_v28, %v2498_v30  ;;  %vm1320_vm11 = vcmp.eq.f32.partialorder %v1319_v38, 8.507059e+37  ;;  %v1120_v56 = vmul.f32 0.5, %v2516_v61 }
 0x2f6   :  { %v1278_v12 = vsel %vm1277_vm6, %v1637_v35, %v1274_v0  ;;  %v1349_v37 = vadd.f32 1.0, %v1348_v13  ;;  %v1338_v63 = vadd.f32 1.1283791, %v1337_v32 }
 0x2f7   :  { %v1283_v10 = vsel %vm1280_vm7, %v1282_v15, %v1278_v12  ;;  %v1639_v8 = vpop.eup %1638 }
 0x2f8   :  { %v1284_v51 = vmul.f32 %v1283_v10, %v1259_v3  ;;  %1640 = vrcp.f32 %v1349_v37  ;;  %v1311_v16 = vmul.f32 %v1639_v8, %v1309_v26  ;;  %vm1316_vm8 = vweird.f32 %v1639_v8 }
 0x2f9   :  { %vm1317_vm10 = vmor %vm1315_vm9, %vm1316_vm8  ;;  %v1361_v6 = vand.u32 2147483648, %v1349_v37  ;;  %v1359_v5 = vand.u32 2147483647, %v1349_v37  ;;  %vm1355_vm13 = vweird.f32 %v1349_v37  ;;  %v1339_v53 = vmul.f32 %v1338_v63, %v2521_v59  ;;  %v1411_v59 = vld [vmem:[%s2583_s10] sm:$0x3]  ;;  %s1779_s10 = smov [#allocation10]  }
 0x2fa   :  { %v1541_v55 = vclamps-f32 %v1284_v51, 1.0  ;;  %v1312_v19 = vsub.f32 1.0, %v1311_v16  ;;  %v1414_v7 = vperm.slane %v1411_v59, 1  ;;  %v1413_v62 = vperm.slane %v1411_v59, 0  ;;  %s1503_s16 = sshll.u32 %s1779_s10, 4  ;;  %s1504_s16 = int_to_ptr.vmem [resolvable:$true] %s1503_s16 }
 0x2fb   :  { %v1362_v22 = vor.u32 1.1754944e-38, %v1361_v6  ;;  %vm1360_vm15 = vcmp.eq.f32.partialorder %v1359_v5, 8.507059e+37 }
 0x2fc   :  { %v1370_v36 = vadd.f32 1.0, %v1541_v55  ;;  %v1313_v58 = vmul.f32 %v1639_v8, %v1312_v19 }
 0x2fe   :  { %v1641_v43 = vpop.eup %1640  ;;  %v1376_v48 = vmul.f32 %v1370_v36, %v1118_v1  ;;  %v1314_v42 = vadd.f32 %v1639_v8, %v1313_v58 }
 0x2ff   :  { %v1351_v14 = vmul.f32 %v1641_v43, %v1349_v37  ;;  %vm1356_vm12 = vweird.f32 %v1641_v43 }
 0x300   :  { %1442 = vmatmul.f32.gmra.mxu3 %v1376_v48  ;;  %1477 = vmatmul.f32.gmra.mxu0 %v1376_v48  ;;  %v1318_v21 = vsel %vm1317_vm10, %v1639_v8, %v1314_v42  ;;  %vm1357_vm14 = vmor %vm1355_vm13, %vm1356_vm12 }
 0x301   :  { %v1352_v23 = vsub.f32 1.0, %v1351_v14  ;;  %v1323_v33 = vsel %vm1320_vm11, %v1322_v39, %v1318_v21 }
 0x302   :  { %v1324_v29 = vmul.f32 %v1323_v33, %v1299_v27 }
 0x303   :  { %v1353_v4 = vmul.f32 %v1641_v43, %v1352_v23 }
 0x304   :  { %v1542_v11 = vclamps-f32 %v1324_v29, 1.0 }
 0x305   :  { %v1354_v44 = vadd.f32 %v1641_v43, %v1353_v4 }
 0x306   :  { %v1371_v35 = vadd.f32 1.0, %v1542_v11 }
 0x307   :  { %v1358_v30 = vsel %vm1357_vm14, %v1641_v43, %v1354_v44 }
 0x308   :  { %v1363_v46 = vsel %vm1360_vm15, %v1362_v22, %v1358_v30  ;;  %v1377_v50 = vmul.f32 %v1371_v35, %v1119_v45 }
 0x309   :  { %v1364_v9 = vmul.f32 %v1363_v46, %v1339_v53 }
 0x30a   :  { %1445 = vmatmul.f32.gmra.mxu3 %v1377_v50  ;;  %1480 = vmatmul.f32.vlgmr.msrb.gmra.mxu2 %v1377_v50 }
 0x30b   :  { %v1543_v41 = vclamps-f32 %v1364_v9, 1.0 }
 0x30d   :  { %v1372_v49 = vadd.f32 1.0, %v1543_v41 }
 0x30f   :  { %v1378_v40 = vmul.f32 %v1372_v49, %v1120_v56 }
 0x312   :  { %1448 = vmatmul.f32.gmra.mxu3 %v1378_v40  ;;  %1483 = vmatmul.f32.gmra.mxu2 %v1378_v40 }
 0x35e   :  { %v1469_v54 = vpop.f32.mrf.mxu0 }
 0x35f   :  { %v1470_v20 = vadd.f32 %v1469_v54, %v1414_v7 }
 0x361   :  { %1488 = vst [vmem:[#allocation10 + $0x8] sm:$0xff] %v1470_v20 }
 0x364   :  { %v1434_v57 = vpop.f32.mrf.mxu3 }
 0x365   :  { %v1435_v60 = vadd.f32 %v1434_v57, %v1413_v62 }
 0x367   :  { %1487 = vst [vmem:[#allocation10] sm:$0xff] %v1435_v60  ;;  %v1472_v26 = vpop.f32.mrf.mxu0 }
 0x368   :  { %v1473_v17 = vadd.f32 %v1472_v26, %v1414_v7 }
 0x36a   :  { %1490 = vst [vmem:[#allocation10 + $0x18] sm:$0xff] %v1473_v17 }
 0x36d   :  { %v1437_v25 = vpop.f32.mrf.mxu3 }
 0x36e   :  { %v1438_v61 = vadd.f32 %v1437_v25, %v1413_v62 }
 0x370   :  { %1489 = vst [vmem:[#allocation10 + $0x10] sm:$0xff] %v1438_v61 }
 0x371   :  { %v1475_v47 = vpop.f32.mrf.mxu0 }
 0x372   :  { %v1476_v2 = vadd.f32 %v1475_v47, %v1414_v7 }
 0x374   :  { %1492 = vst [vmem:[#allocation10 + $0x28] sm:$0xff] %v1476_v2 }
 0x377   :  { %v1440_v0 = vpop.f32.mrf.mxu3 }
 0x378   :  { %v1441_v13 = vadd.f32 %v1440_v0, %v1413_v62 }
 0x37a   :  { %1491 = vst [vmem:[#allocation10 + $0x20] sm:$0xff] %v1441_v13 }
 0x37d   :  { %v1478_v31 = vpop.f32.mrf.mxu0 }
 0x37e   :  { %v1479_v18 = vadd.f32 %v1478_v31, %v1414_v7 }
 0x380   :  { %1494 = vst [vmem:[#allocation10 + $0x38] sm:$0xff] %v1479_v18 }
 0x383   :  { %v1443_v15 = vpop.f32.mrf.mxu3 }
 0x384   :  { %v1444_v3 = vadd.f32 %v1443_v15, %v1413_v62 }
 0x386   :  { %1493 = vst [vmem:[#allocation10 + $0x30] sm:$0xff] %v1444_v3 }
 0x38d   :  { %v1446_v12 = vpop.f32.mrf.mxu3  ;;  %v1481_v37 = vpop.f32.mrf.mxu2 }
 0x38e   :  { %v1447_v10 = vadd.f32 %v1446_v12, %v1413_v62  ;;  %v1482_v51 = vadd.f32 %v1481_v37, %v1414_v7 }
 0x390   :  { %1495 = vst [vmem:[#allocation10 + $0x40] sm:$0xff] %v1447_v10 }
 0x391   :  { %1496 = vst [vmem:[#allocation10 + $0x48] sm:$0xff] %v1482_v51 }
 0x395   :  { %v1449_v8 = vpop.f32.mrf.mxu3  ;;  %v1484_v24 = vpop.f32.mrf.mxu2 }
 0x396   :  { %v1450_v34 = vadd.f32 %v1449_v8, %v1413_v62  ;;  %v1485_v55 = vadd.f32 %v1484_v24, %v1414_v7 }
 0x398   :  { %1497 = vst [vmem:[#allocation10 + $0x50] sm:$0xff] %v1450_v34 }
 0x399   :  { %1498 = vst [vmem:[#allocation10 + $0x58] sm:$0xff] %v1485_v55 }
 0x39a   :  { %1511 = dma.vmem_to_hbm [thread:$0]  %s1504_s16, 1536, %s1506_s4, [#allocation4], %s1776_s18, %s1776_s18, %s1777_s19  }
 0x39b   :  { %1768 = dma.done.wait [#allocation4], 1536  }
 0x39c   :  { %1769 = vsyncadd [#allocation4], 4294965760 }
 0x39d   :  { %1516 = vsyncpa [#allocation3], 1 }
 0x39e   :  { %1517 = vsyncpa [#allocation6], 1 }
 0x39f   :  { %1518 = vsyncpa [#allocation9], 1 }
 0x3a0   :  { %1519 = vsyncpa [#allocation4], 1 }

</bundles_post_ra>
